<compile_context>
chip_gen: v7x
topology: tpu7x:2x2x1
jax: 0.10.0
libtpu: 0.0.40
codegen_flags: <defaults>
</compile_context>

<pallas_src>
import functools

import jax
import jax.numpy as jnp
import numpy as np
from jax import lax
from jax.experimental import pallas as pl
from jax.experimental.pallas import tpu as pltpu

TAU = 1.75        # MultiStepLIFNode tau
V_TH = 1.0        # default v_threshold (hard reset to v_reset = 0)
BN_EPS = 1e-5     # nn.BatchNorm2d default eps


def mlp_kernel(x_ref, w1_ref, sh1_ref, w2_ref, sh2_ref, o_ref, *, tau):
    """One lane tile (all batch*pixels in this tile), full time dimension T.

    x_ref  : (T, C_in, tile)   input currents (f32)
    w1_ref : (hidden, C_in)    conv1 weight, BN1 scale folded in (bf16)
    sh1_ref: (hidden, 1)       conv1 bias + BN1 shift (f32)
    w2_ref : (C_out, hidden)   conv2 weight, BN2 scale folded in (bf16)
    sh2_ref: (C_out, 1)        conv2 bias + BN2 shift (f32)
    o_ref  : (T, C_out, tile)
    """
    T, c_in, tile = x_ref.shape
    hidden = w1_ref.shape[0]
    c_out = w2_ref.shape[0]
    inv_tau = jnp.float32(1.0 / tau)

    # Hoist parameter loads and shift broadcasts out of the time loop
    # (JAX does not CSE broadcast_in_dim inside unrolled loops).
    w1 = w1_ref[...]
    w2 = w2_ref[...]
    sh1 = jnp.broadcast_to(sh1_ref[...], (hidden, tile))
    sh2 = jnp.broadcast_to(sh2_ref[...], (c_out, tile))

    def step(t, v1, v2):
        # --- LIF 1: charge / fire / hard reset (v_reset = 0) ---
        v1 = v1 + (x_ref[t] - v1) * inv_tau
        spk1 = v1 >= V_TH
        v1 = jnp.where(spk1, 0.0, v1)
        # --- conv1 (+ folded BN1): per-pixel matmul over channels (bf16 -> f32 acc)
        h = jnp.dot(w1, spk1.astype(jnp.bfloat16),
                    preferred_element_type=jnp.float32) + sh1
        # --- LIF 2 ---
        v2 = v2 + (h - v2) * inv_tau
        spk2 = v2 >= V_TH
        v2 = jnp.where(spk2, 0.0, v2)
        # --- conv2 (+ folded BN2) ---
        y = jnp.dot(w2, spk2.astype(jnp.bfloat16),
                    preferred_element_type=jnp.float32) + sh2
        o_ref[t] = y.astype(o_ref.dtype)
        return v1, v2

    v1 = jnp.zeros((c_in, tile), jnp.float32)
    v2 = jnp.zeros((hidden, tile), jnp.float32)
    if T <= 8:
        # Short time dimension: static unroll (LLO sees everything).
        for t in range(T):
            v1, v2 = step(t, v1, v2)
    else:
        # Long time dimension: bound register pressure with a visible loop.
        lax.fori_loop(0, T, lambda t, c: step(t, *c), (v1, v2), unroll=2)


def _vmem_capacity_bytes():
    """Physical VMEM of this generation; conservative fallback if unknown."""
    try:
        return int(pltpu.get_tpu_info().vmem_capacity_bytes)
    except Exception:
        return 64 * 1024 * 1024   # v7x per-TensorCore capacity (smallest)


def _pick_tile(n, T, c_in, hidden, c_out, budget_bytes, max_tile=4096):
    """Largest multiple-of-128 lane tile that fits the per-step VMEM budget."""
    per_col = (
        4 * (2 * T * c_in            # double-buffered input block (f32)
             + 2 * T * c_out         # double-buffered output block (f32)
             + c_in + 2 * hidden + c_out)   # live f32 values (v1, h, v2, y)
        + 2 * (c_in + hidden)        # bf16 spike operands
    )
    tile = (budget_bytes // max(per_col, 1)) // 128 * 128
    tile = max(128, min(max_tile, tile))
    n128 = ((n + 127) // 128) * 128  # no point tiling wider than the problem
    return min(tile, n128)


def _fold_bn(w, b, gamma, beta, mean, var):
    """Fold eval-mode BatchNorm into 1x1-conv weight (scale) and shift.

    Weights are stored in bf16 for the MXU; spikes (0/1) are exact in bf16.
    """
    c_out, c_in = w.shape[0], w.shape[1]
    sc = gamma / jnp.sqrt(var + BN_EPS)
    shift = (b - mean) * sc + beta
    w_folded = (w.reshape(c_out, c_in) * sc[:, None]).astype(jnp.bfloat16)
    return w_folded, shift.astype(jnp.float32)


def mlp_pallas(x, params, *, tile_n=None):
    (w1, b1, g1, be1, m1, var1, w2, b2, g2, be2, m2, var2) = params
    T, B, C, H, W = x.shape
    hidden = w1.shape[0]
    c_out = w2.shape[0]
    HW = H * W
    N = B * HW

    w1f, sh1 = _fold_bn(w1, b1, g1, be1, m1, var1)
    w2f, sh2 = _fold_bn(w2, b2, g2, be2, m2, var2)

    # Per-generation VMEM sizing.
    cap = _vmem_capacity_bytes()
    vmem_limit = (3 * cap) // 4                  # 96 MiB on v5e/v6e, 48 MiB on v7x
    if tile_n is None:
        tile_n = _pick_tile(N, T, C, hidden, c_out, budget_bytes=vmem_limit // 2)

    # Lane-dense relayout: (T,B,C,H,W) -> (T, C, B*HW), pixel*batch on lanes.
    x4 = jnp.transpose(x.reshape(T, B, C, HW), (0, 2, 1, 3)).reshape(T, C, N)
    n_pad = -(-N // tile_n) * tile_n
    if n_pad != N:
        # Zero-padded lanes produce no spikes; sliced off after the call.
        x4 = jnp.pad(x4, ((0, 0), (0, 0), (0, n_pad - N)))

    kernel = functools.partial(mlp_kernel, tau=TAU)
    out = pl.pallas_call(
        kernel,
        out_shape=jax.ShapeDtypeStruct((T, c_out, n_pad), jnp.float32),
        grid_spec=pltpu.PrefetchScalarGridSpec(
            num_scalar_prefetch=0,
            grid=(n_pad // tile_n,),
            in_specs=[
                pl.BlockSpec((T, C, tile_n), lambda s: (0, 0, s)),
                pl.BlockSpec((hidden, C), lambda s: (0, 0)),
                pl.BlockSpec((hidden, 1), lambda s: (0, 0)),
                pl.BlockSpec((c_out, hidden), lambda s: (0, 0)),
                pl.BlockSpec((c_out, 1), lambda s: (0, 0)),
            ],
            out_specs=pl.BlockSpec((T, c_out, tile_n), lambda s: (0, 0, s)),
        ),
        compiler_params=pltpu.CompilerParams(
            dimension_semantics=("parallel",),
            vmem_limit_bytes=int(vmem_limit)),
    )(x4, w1f, sh1[:, None], w2f, sh2[:, None])

    out = out[:, :, :N].reshape(T, c_out, B, HW)
    out = jnp.transpose(out, (0, 2, 1, 3)).reshape(T, B, c_out, H, W)
    return out


def mlp_ref(x, params):
    """Pure-JAX reference mirroring the PyTorch forward (eval-mode BN).

    Uses the same BN-folded bf16 weights as the kernel so kernel/reference
    numerics are aligned (spikes are exact in bf16; accumulation is f32).
    """
    (w1, b1, g1, be1, m1, var1, w2, b2, g2, be2, m2, var2) = params
    T, B, C, H, W = x.shape
    c_out = w2.shape[0]
    x4 = x.reshape(T, B, C, H * W)

    w1f, sh1 = _fold_bn(w1, b1, g1, be1, m1, var1)
    w2f, sh2 = _fold_bn(w2, b2, g2, be2, m2, var2)

    def lif(seq):
        v = jnp.zeros_like(seq[0])
        outs = []
        for t in range(seq.shape[0]):
            v = v + (seq[t] - v) / TAU           # charge (v_reset = 0)
            s = (v >= V_TH).astype(jnp.float32)  # fire
            v = v * (1.0 - s)                    # hard reset
            outs.append(s)
        return jnp.stack(outs)

    s1 = lif(x4)
    h = jnp.einsum('oc,tbcn->tbon', w1f, s1.astype(jnp.bfloat16),
                   preferred_element_type=jnp.float32)
    h = h + sh1[None, None, :, None]
    s2 = lif(h)
    y = jnp.einsum('oh,tbhn->tbon', w2f, s2.astype(jnp.bfloat16),
                   preferred_element_type=jnp.float32)
    y = y + sh2[None, None, :, None]
    return y.reshape(T, B, c_out, H, W)


if __name__ == "__main__":
    T, B, C, H, W = 8, 2, 4, 16, 16      # small shapes consistent with forward
    hidden, c_out = 8, 4                 # out_features defaults to in_features

    keys = jax.random.split(jax.random.PRNGKey(0), 13)
    x = jax.random.uniform(keys[0], (T, B, C, H, W), jnp.float32, 0.0, 3.0)

    # conv1 / bn1 params
    w1 = jax.random.normal(keys[1], (hidden, C, 1, 1), jnp.float32) * 0.5
    b1 = jax.random.normal(keys[2], (hidden,), jnp.float32) * 0.1
    g1 = jax.random.uniform(keys[3], (hidden,), jnp.float32, 0.5, 1.5)
    be1 = jax.random.normal(keys[4], (hidden,), jnp.float32) * 0.1
    m1 = jax.random.normal(keys[5], (hidden,), jnp.float32) * 0.1
    var1 = jax.random.uniform(keys[6], (hidden,), jnp.float32, 0.5, 1.5)

    # conv2 / bn2 params
    w2 = jax.random.normal(keys[7], (c_out, hidden, 1, 1), jnp.float32) * 0.5
    b2 = jax.random.normal(keys[8], (c_out,), jnp.float32) * 0.1
    g2 = jax.random.uniform(keys[9], (c_out,), jnp.float32, 0.5, 1.5)
    be2 = jax.random.normal(keys[10], (c_out,), jnp.float32) * 0.1
    m2 = jax.random.normal(keys[11], (c_out,), jnp.float32) * 0.1
    var2 = jax.random.uniform(keys[12], (c_out,), jnp.float32, 0.5, 1.5)

    params = (w1, b1, g1, be1, m1, var1, w2, b2, g2, be2, m2, var2)

    out = jax.block_until_ready(mlp_pallas(x, params))
    ref = jax.block_until_ready(mlp_ref(x, params))
    np.testing.assert_allclose(np.asarray(out), np.asarray(ref),
                               rtol=1e-3, atol=1e-3)
    assert out.shape == (T, B, c_out, H, W)
    print("KERNEL_OK")
</pallas_src>

<mosaic_0001>
module attributes {stable_mosaic.version = 11 : i64} {
  func.func @mlp_kernel(%arg0: i32, %arg1: memref<8x4x512xf32, #tpu.memory_space<vmem>>, %arg2: memref<8x4xbf16, #tpu.memory_space<vmem>>, %arg3: memref<8x1xf32, #tpu.memory_space<vmem>>, %arg4: memref<4x8xbf16, #tpu.memory_space<vmem>>, %arg5: memref<4x1xf32, #tpu.memory_space<vmem>>, %arg6: memref<8x4x512xf32, #tpu.memory_space<vmem>>) attributes {dimension_semantics = [#tpu.dimension_semantics<parallel>], iteration_bounds = array<i64: 1>, scalar_prefetch = 0 : i64, scratch_operands = 0 : i64, tpu.core_type = #tpu.core_type<tc>, window_params = [{transform_indices = @transform_0, window_bounds = array<i64: 8, 4, 512>}, {pipeline_mode = #tpu.pipeline_mode<synchronous>, transform_indices = @transform_1, window_bounds = array<i64: 8, 4>}, {pipeline_mode = #tpu.pipeline_mode<synchronous>, transform_indices = @transform_2, window_bounds = array<i64: 8, 1>}, {pipeline_mode = #tpu.pipeline_mode<synchronous>, transform_indices = @transform_3, window_bounds = array<i64: 4, 8>}, {pipeline_mode = #tpu.pipeline_mode<synchronous>, transform_indices = @transform_4, window_bounds = array<i64: 4, 1>}, {transform_indices = @transform_5, window_bounds = array<i64: 8, 4, 512>}]} {
    %c0 = arith.constant 0 : index
    %c0_0 = arith.constant 0 : index
    %0 = vector.load %arg2[%c0, %c0_0] : memref<8x4xbf16, #tpu.memory_space<vmem>>, vector<8x4xbf16>
    %c0_1 = arith.constant 0 : index
    %c0_2 = arith.constant 0 : index
    %1 = vector.load %arg4[%c0_1, %c0_2] : memref<4x8xbf16, #tpu.memory_space<vmem>>, vector<4x8xbf16>
    %c0_3 = arith.constant 0 : index
    %c0_4 = arith.constant 0 : index
    %2 = vector.load %arg3[%c0_3, %c0_4] : memref<8x1xf32, #tpu.memory_space<vmem>>, vector<8x1xf32>
    %3 = vector.shape_cast %2 : vector<8x1xf32> to vector<8x1xf32>
    %4 = vector.broadcast %3 : vector<8x1xf32> to vector<8x512xf32>
    %c0_5 = arith.constant 0 : index
    %c0_6 = arith.constant 0 : index
    %5 = vector.load %arg5[%c0_5, %c0_6] : memref<4x1xf32, #tpu.memory_space<vmem>>, vector<4x1xf32>
    %6 = vector.shape_cast %5 : vector<4x1xf32> to vector<4x1xf32>
    %7 = vector.broadcast %6 : vector<4x1xf32> to vector<4x512xf32>
    %cst = arith.constant 0.000000e+00 : f32
    %8 = vector.broadcast %cst : f32 to vector<4x512xf32>
    %cst_7 = arith.constant 0.000000e+00 : f32
    %9 = vector.broadcast %cst_7 : f32 to vector<8x512xf32>
    %c0_8 = arith.constant 0 : index
    %c0_9 = arith.constant 0 : index
    %c0_10 = arith.constant 0 : index
    %10 = vector.load %arg1[%c0_8, %c0_9, %c0_10] : memref<8x4x512xf32, #tpu.memory_space<vmem>>, vector<1x4x512xf32>
    %11 = vector.shape_cast %10 : vector<1x4x512xf32> to vector<4x512xf32>
    %12 = arith.subf %11, %8 : vector<4x512xf32>
    %cst_11 = arith.constant 0.571428597 : f32
    %13 = vector.broadcast %cst_11 : f32 to vector<4x512xf32>
    %14 = arith.mulf %12, %13 : vector<4x512xf32>
    %15 = arith.addf %8, %14 : vector<4x512xf32>
    %cst_12 = arith.constant 1.000000e+00 : f32
    %16 = vector.broadcast %cst_12 : f32 to vector<4x512xf32>
    %17 = arith.cmpf oge, %15, %16 : vector<4x512xf32>
    %cst_13 = arith.constant 0.000000e+00 : f32
    %18 = vector.broadcast %cst_13 : f32 to vector<4x512xf32>
    %19 = arith.select %17, %18, %15 : vector<4x512xi1>, vector<4x512xf32>
    %20 = arith.extui %17 : vector<4x512xi1> to vector<4x512xi32>
    %21 = arith.sitofp %20 : vector<4x512xi32> to vector<4x512xf32>
    %22 = arith.truncf %21 : vector<4x512xf32> to vector<4x512xbf16>
    %cst_14 = arith.constant dense<0.000000e+00> : vector<8x512xf32>
    %23 = tpu.matmul %0, %22, %cst_14 {dimension_numbers = #tpu.dot_dimension_numbers<[1], [0], [0], [1], [0, 0, 1, 1], [], []>} : vector<8x4xbf16>, vector<4x512xbf16>, vector<8x512xf32> -> vector<8x512xf32>
    %24 = arith.addf %23, %4 : vector<8x512xf32>
    %25 = arith.subf %24, %9 : vector<8x512xf32>
    %cst_15 = arith.constant 0.571428597 : f32
    %26 = vector.broadcast %cst_15 : f32 to vector<8x512xf32>
    %27 = arith.mulf %25, %26 : vector<8x512xf32>
    %28 = arith.addf %9, %27 : vector<8x512xf32>
    %cst_16 = arith.constant 1.000000e+00 : f32
    %29 = vector.broadcast %cst_16 : f32 to vector<8x512xf32>
    %30 = arith.cmpf oge, %28, %29 : vector<8x512xf32>
    %cst_17 = arith.constant 0.000000e+00 : f32
    %31 = vector.broadcast %cst_17 : f32 to vector<8x512xf32>
    %32 = arith.select %30, %31, %28 : vector<8x512xi1>, vector<8x512xf32>
    %33 = arith.extui %30 : vector<8x512xi1> to vector<8x512xi32>
    %34 = arith.sitofp %33 : vector<8x512xi32> to vector<8x512xf32>
    %35 = arith.truncf %34 : vector<8x512xf32> to vector<8x512xbf16>
    %cst_18 = arith.constant dense<0.000000e+00> : vector<4x512xf32>
    %36 = tpu.matmul %1, %35, %cst_18 {dimension_numbers = #tpu.dot_dimension_numbers<[1], [0], [0], [1], [0, 0, 1, 1], [], []>} : vector<4x8xbf16>, vector<8x512xbf16>, vector<4x512xf32> -> vector<4x512xf32>
    %37 = arith.addf %36, %7 : vector<4x512xf32>
    %c0_19 = arith.constant 0 : index
    %c0_20 = arith.constant 0 : index
    %c0_21 = arith.constant 0 : index
    %38 = vector.load %arg6[%c0_19, %c0_20, %c0_21] : memref<8x4x512xf32, #tpu.memory_space<vmem>>, vector<1x4x512xf32>
    %39 = vector.shape_cast %38 : vector<1x4x512xf32> to vector<4x512xf32>
    %40 = vector.shape_cast %37 : vector<4x512xf32> to vector<1x4x512xf32>
    tpu.vector_store %arg6[%c0_19, %c0_20, %c0_21], %40 {strides = array<i32>} : memref<8x4x512xf32, #tpu.memory_space<vmem>>, vector<1x4x512xf32>,
    %c1 = arith.constant 1 : index
    %c0_22 = arith.constant 0 : index
    %c0_23 = arith.constant 0 : index
    %41 = vector.load %arg1[%c1, %c0_22, %c0_23] : memref<8x4x512xf32, #tpu.memory_space<vmem>>, vector<1x4x512xf32>
    %42 = vector.shape_cast %41 : vector<1x4x512xf32> to vector<4x512xf32>
    %43 = arith.subf %42, %19 : vector<4x512xf32>
    %cst_24 = arith.constant 0.571428597 : f32
    %44 = vector.broadcast %cst_24 : f32 to vector<4x512xf32>
    %45 = arith.mulf %43, %44 : vector<4x512xf32>
    %46 = arith.addf %19, %45 : vector<4x512xf32>
    %cst_25 = arith.constant 1.000000e+00 : f32
    %47 = vector.broadcast %cst_25 : f32 to vector<4x512xf32>
    %48 = arith.cmpf oge, %46, %47 : vector<4x512xf32>
    %cst_26 = arith.constant 0.000000e+00 : f32
    %49 = vector.broadcast %cst_26 : f32 to vector<4x512xf32>
    %50 = arith.select %48, %49, %46 : vector<4x512xi1>, vector<4x512xf32>
    %51 = arith.extui %48 : vector<4x512xi1> to vector<4x512xi32>
    %52 = arith.sitofp %51 : vector<4x512xi32> to vector<4x512xf32>
    %53 = arith.truncf %52 : vector<4x512xf32> to vector<4x512xbf16>
    %cst_27 = arith.constant dense<0.000000e+00> : vector<8x512xf32>
    %54 = tpu.matmul %0, %53, %cst_27 {dimension_numbers = #tpu.dot_dimension_numbers<[1], [0], [0], [1], [0, 0, 1, 1], [], []>} : vector<8x4xbf16>, vector<4x512xbf16>, vector<8x512xf32> -> vector<8x512xf32>
    %55 = arith.addf %54, %4 : vector<8x512xf32>
    %56 = arith.subf %55, %32 : vector<8x512xf32>
    %cst_28 = arith.constant 0.571428597 : f32
    %57 = vector.broadcast %cst_28 : f32 to vector<8x512xf32>
    %58 = arith.mulf %56, %57 : vector<8x512xf32>
    %59 = arith.addf %32, %58 : vector<8x512xf32>
    %cst_29 = arith.constant 1.000000e+00 : f32
    %60 = vector.broadcast %cst_29 : f32 to vector<8x512xf32>
    %61 = arith.cmpf oge, %59, %60 : vector<8x512xf32>
    %cst_30 = arith.constant 0.000000e+00 : f32
    %62 = vector.broadcast %cst_30 : f32 to vector<8x512xf32>
    %63 = arith.select %61, %62, %59 : vector<8x512xi1>, vector<8x512xf32>
    %64 = arith.extui %61 : vector<8x512xi1> to vector<8x512xi32>
    %65 = arith.sitofp %64 : vector<8x512xi32> to vector<8x512xf32>
    %66 = arith.truncf %65 : vector<8x512xf32> to vector<8x512xbf16>
    %cst_31 = arith.constant dense<0.000000e+00> : vector<4x512xf32>
    %67 = tpu.matmul %1, %66, %cst_31 {dimension_numbers = #tpu.dot_dimension_numbers<[1], [0], [0], [1], [0, 0, 1, 1], [], []>} : vector<4x8xbf16>, vector<8x512xbf16>, vector<4x512xf32> -> vector<4x512xf32>
    %68 = arith.addf %67, %7 : vector<4x512xf32>
    %c1_32 = arith.constant 1 : index
    %c0_33 = arith.constant 0 : index
    %c0_34 = arith.constant 0 : index
    %69 = vector.load %arg6[%c1_32, %c0_33, %c0_34] : memref<8x4x512xf32, #tpu.memory_space<vmem>>, vector<1x4x512xf32>
    %70 = vector.shape_cast %69 : vector<1x4x512xf32> to vector<4x512xf32>
    %71 = vector.shape_cast %68 : vector<4x512xf32> to vector<1x4x512xf32>
    tpu.vector_store %arg6[%c1_32, %c0_33, %c0_34], %71 {strides = array<i32>} : memref<8x4x512xf32, #tpu.memory_space<vmem>>, vector<1x4x512xf32>,
    %c2 = arith.constant 2 : index
    %c0_35 = arith.constant 0 : index
    %c0_36 = arith.constant 0 : index
    %72 = vector.load %arg1[%c2, %c0_35, %c0_36] : memref<8x4x512xf32, #tpu.memory_space<vmem>>, vector<1x4x512xf32>
    %73 = vector.shape_cast %72 : vector<1x4x512xf32> to vector<4x512xf32>
    %74 = arith.subf %73, %50 : vector<4x512xf32>
    %cst_37 = arith.constant 0.571428597 : f32
    %75 = vector.broadcast %cst_37 : f32 to vector<4x512xf32>
    %76 = arith.mulf %74, %75 : vector<4x512xf32>
    %77 = arith.addf %50, %76 : vector<4x512xf32>
    %cst_38 = arith.constant 1.000000e+00 : f32
    %78 = vector.broadcast %cst_38 : f32 to vector<4x512xf32>
    %79 = arith.cmpf oge, %77, %78 : vector<4x512xf32>
    %cst_39 = arith.constant 0.000000e+00 : f32
    %80 = vector.broadcast %cst_39 : f32 to vector<4x512xf32>
    %81 = arith.select %79, %80, %77 : vector<4x512xi1>, vector<4x512xf32>
    %82 = arith.extui %79 : vector<4x512xi1> to vector<4x512xi32>
    %83 = arith.sitofp %82 : vector<4x512xi32> to vector<4x512xf32>
    %84 = arith.truncf %83 : vector<4x512xf32> to vector<4x512xbf16>
    %cst_40 = arith.constant dense<0.000000e+00> : vector<8x512xf32>
    %85 = tpu.matmul %0, %84, %cst_40 {dimension_numbers = #tpu.dot_dimension_numbers<[1], [0], [0], [1], [0, 0, 1, 1], [], []>} : vector<8x4xbf16>, vector<4x512xbf16>, vector<8x512xf32> -> vector<8x512xf32>
    %86 = arith.addf %85, %4 : vector<8x512xf32>
    %87 = arith.subf %86, %63 : vector<8x512xf32>
    %cst_41 = arith.constant 0.571428597 : f32
    %88 = vector.broadcast %cst_41 : f32 to vector<8x512xf32>
    %89 = arith.mulf %87, %88 : vector<8x512xf32>
    %90 = arith.addf %63, %89 : vector<8x512xf32>
    %cst_42 = arith.constant 1.000000e+00 : f32
    %91 = vector.broadcast %cst_42 : f32 to vector<8x512xf32>
    %92 = arith.cmpf oge, %90, %91 : vector<8x512xf32>
    %cst_43 = arith.constant 0.000000e+00 : f32
    %93 = vector.broadcast %cst_43 : f32 to vector<8x512xf32>
    %94 = arith.select %92, %93, %90 : vector<8x512xi1>, vector<8x512xf32>
    %95 = arith.extui %92 : vector<8x512xi1> to vector<8x512xi32>
    %96 = arith.sitofp %95 : vector<8x512xi32> to vector<8x512xf32>
    %97 = arith.truncf %96 : vector<8x512xf32> to vector<8x512xbf16>
    %cst_44 = arith.constant dense<0.000000e+00> : vector<4x512xf32>
    %98 = tpu.matmul %1, %97, %cst_44 {dimension_numbers = #tpu.dot_dimension_numbers<[1], [0], [0], [1], [0, 0, 1, 1], [], []>} : vector<4x8xbf16>, vector<8x512xbf16>, vector<4x512xf32> -> vector<4x512xf32>
    %99 = arith.addf %98, %7 : vector<4x512xf32>
    %c2_45 = arith.constant 2 : index
    %c0_46 = arith.constant 0 : index
    %c0_47 = arith.constant 0 : index
    %100 = vector.load %arg6[%c2_45, %c0_46, %c0_47] : memref<8x4x512xf32, #tpu.memory_space<vmem>>, vector<1x4x512xf32>
    %101 = vector.shape_cast %100 : vector<1x4x512xf32> to vector<4x512xf32>
    %102 = vector.shape_cast %99 : vector<4x512xf32> to vector<1x4x512xf32>
    tpu.vector_store %arg6[%c2_45, %c0_46, %c0_47], %102 {strides = array<i32>} : memref<8x4x512xf32, #tpu.memory_space<vmem>>, vector<1x4x512xf32>,
    %c3 = arith.constant 3 : index
    %c0_48 = arith.constant 0 : index
    %c0_49 = arith.constant 0 : index
    %103 = vector.load %arg1[%c3, %c0_48, %c0_49] : memref<8x4x512xf32, #tpu.memory_space<vmem>>, vector<1x4x512xf32>
    %104 = vector.shape_cast %103 : vector<1x4x512xf32> to vector<4x512xf32>
    %105 = arith.subf %104, %81 : vector<4x512xf32>
    %cst_50 = arith.constant 0.571428597 : f32
    %106 = vector.broadcast %cst_50 : f32 to vector<4x512xf32>
    %107 = arith.mulf %105, %106 : vector<4x512xf32>
    %108 = arith.addf %81, %107 : vector<4x512xf32>
    %cst_51 = arith.constant 1.000000e+00 : f32
    %109 = vector.broadcast %cst_51 : f32 to vector<4x512xf32>
    %110 = arith.cmpf oge, %108, %109 : vector<4x512xf32>
    %cst_52 = arith.constant 0.000000e+00 : f32
    %111 = vector.broadcast %cst_52 : f32 to vector<4x512xf32>
    %112 = arith.select %110, %111, %108 : vector<4x512xi1>, vector<4x512xf32>
    %113 = arith.extui %110 : vector<4x512xi1> to vector<4x512xi32>
    %114 = arith.sitofp %113 : vector<4x512xi32> to vector<4x512xf32>
    %115 = arith.truncf %114 : vector<4x512xf32> to vector<4x512xbf16>
    %cst_53 = arith.constant dense<0.000000e+00> : vector<8x512xf32>
    %116 = tpu.matmul %0, %115, %cst_53 {dimension_numbers = #tpu.dot_dimension_numbers<[1], [0], [0], [1], [0, 0, 1, 1], [], []>} : vector<8x4xbf16>, vector<4x512xbf16>, vector<8x512xf32> -> vector<8x512xf32>
    %117 = arith.addf %116, %4 : vector<8x512xf32>
    %118 = arith.subf %117, %94 : vector<8x512xf32>
    %cst_54 = arith.constant 0.571428597 : f32
    %119 = vector.broadcast %cst_54 : f32 to vector<8x512xf32>
    %120 = arith.mulf %118, %119 : vector<8x512xf32>
    %121 = arith.addf %94, %120 : vector<8x512xf32>
    %cst_55 = arith.constant 1.000000e+00 : f32
    %122 = vector.broadcast %cst_55 : f32 to vector<8x512xf32>
    %123 = arith.cmpf oge, %121, %122 : vector<8x512xf32>
    %cst_56 = arith.constant 0.000000e+00 : f32
    %124 = vector.broadcast %cst_56 : f32 to vector<8x512xf32>
    %125 = arith.select %123, %124, %121 : vector<8x512xi1>, vector<8x512xf32>
    %126 = arith.extui %123 : vector<8x512xi1> to vector<8x512xi32>
    %127 = arith.sitofp %126 : vector<8x512xi32> to vector<8x512xf32>
    %128 = arith.truncf %127 : vector<8x512xf32> to vector<8x512xbf16>
    %cst_57 = arith.constant dense<0.000000e+00> : vector<4x512xf32>
    %129 = tpu.matmul %1, %128, %cst_57 {dimension_numbers = #tpu.dot_dimension_numbers<[1], [0], [0], [1], [0, 0, 1, 1], [], []>} : vector<4x8xbf16>, vector<8x512xbf16>, vector<4x512xf32> -> vector<4x512xf32>
    %130 = arith.addf %129, %7 : vector<4x512xf32>
    %c3_58 = arith.constant 3 : index
    %c0_59 = arith.constant 0 : index
    %c0_60 = arith.constant 0 : index
    %131 = vector.load %arg6[%c3_58, %c0_59, %c0_60] : memref<8x4x512xf32, #tpu.memory_space<vmem>>, vector<1x4x512xf32>
    %132 = vector.shape_cast %131 : vector<1x4x512xf32> to vector<4x512xf32>
    %133 = vector.shape_cast %130 : vector<4x512xf32> to vector<1x4x512xf32>
    tpu.vector_store %arg6[%c3_58, %c0_59, %c0_60], %133 {strides = array<i32>} : memref<8x4x512xf32, #tpu.memory_space<vmem>>, vector<1x4x512xf32>,
    %c4 = arith.constant 4 : index
    %c0_61 = arith.constant 0 : index
    %c0_62 = arith.constant 0 : index
    %134 = vector.load %arg1[%c4, %c0_61, %c0_62] : memref<8x4x512xf32, #tpu.memory_space<vmem>>, vector<1x4x512xf32>
    %135 = vector.shape_cast %134 : vector<1x4x512xf32> to vector<4x512xf32>
    %136 = arith.subf %135, %112 : vector<4x512xf32>
    %cst_63 = arith.constant 0.571428597 : f32
    %137 = vector.broadcast %cst_63 : f32 to vector<4x512xf32>
    %138 = arith.mulf %136, %137 : vector<4x512xf32>
    %139 = arith.addf %112, %138 : vector<4x512xf32>
    %cst_64 = arith.constant 1.000000e+00 : f32
    %140 = vector.broadcast %cst_64 : f32 to vector<4x512xf32>
    %141 = arith.cmpf oge, %139, %140 : vector<4x512xf32>
    %cst_65 = arith.constant 0.000000e+00 : f32
    %142 = vector.broadcast %cst_65 : f32 to vector<4x512xf32>
    %143 = arith.select %141, %142, %139 : vector<4x512xi1>, vector<4x512xf32>
    %144 = arith.extui %141 : vector<4x512xi1> to vector<4x512xi32>
    %145 = arith.sitofp %144 : vector<4x512xi32> to vector<4x512xf32>
    %146 = arith.truncf %145 : vector<4x512xf32> to vector<4x512xbf16>
    %cst_66 = arith.constant dense<0.000000e+00> : vector<8x512xf32>
    %147 = tpu.matmul %0, %146, %cst_66 {dimension_numbers = #tpu.dot_dimension_numbers<[1], [0], [0], [1], [0, 0, 1, 1], [], []>} : vector<8x4xbf16>, vector<4x512xbf16>, vector<8x512xf32> -> vector<8x512xf32>
    %148 = arith.addf %147, %4 : vector<8x512xf32>
    %149 = arith.subf %148, %125 : vector<8x512xf32>
    %cst_67 = arith.constant 0.571428597 : f32
    %150 = vector.broadcast %cst_67 : f32 to vector<8x512xf32>
    %151 = arith.mulf %149, %150 : vector<8x512xf32>
    %152 = arith.addf %125, %151 : vector<8x512xf32>
    %cst_68 = arith.constant 1.000000e+00 : f32
    %153 = vector.broadcast %cst_68 : f32 to vector<8x512xf32>
    %154 = arith.cmpf oge, %152, %153 : vector<8x512xf32>
    %cst_69 = arith.constant 0.000000e+00 : f32
    %155 = vector.broadcast %cst_69 : f32 to vector<8x512xf32>
    %156 = arith.select %154, %155, %152 : vector<8x512xi1>, vector<8x512xf32>
    %157 = arith.extui %154 : vector<8x512xi1> to vector<8x512xi32>
    %158 = arith.sitofp %157 : vector<8x512xi32> to vector<8x512xf32>
    %159 = arith.truncf %158 : vector<8x512xf32> to vector<8x512xbf16>
    %cst_70 = arith.constant dense<0.000000e+00> : vector<4x512xf32>
    %160 = tpu.matmul %1, %159, %cst_70 {dimension_numbers = #tpu.dot_dimension_numbers<[1], [0], [0], [1], [0, 0, 1, 1], [], []>} : vector<4x8xbf16>, vector<8x512xbf16>, vector<4x512xf32> -> vector<4x512xf32>
    %161 = arith.addf %160, %7 : vector<4x512xf32>
    %c4_71 = arith.constant 4 : index
    %c0_72 = arith.constant 0 : index
    %c0_73 = arith.constant 0 : index
    %162 = vector.load %arg6[%c4_71, %c0_72, %c0_73] : memref<8x4x512xf32, #tpu.memory_space<vmem>>, vector<1x4x512xf32>
    %163 = vector.shape_cast %162 : vector<1x4x512xf32> to vector<4x512xf32>
    %164 = vector.shape_cast %161 : vector<4x512xf32> to vector<1x4x512xf32>
    tpu.vector_store %arg6[%c4_71, %c0_72, %c0_73], %164 {strides = array<i32>} : memref<8x4x512xf32, #tpu.memory_space<vmem>>, vector<1x4x512xf32>,
    %c5 = arith.constant 5 : index
    %c0_74 = arith.constant 0 : index
    %c0_75 = arith.constant 0 : index
    %165 = vector.load %arg1[%c5, %c0_74, %c0_75] : memref<8x4x512xf32, #tpu.memory_space<vmem>>, vector<1x4x512xf32>
    %166 = vector.shape_cast %165 : vector<1x4x512xf32> to vector<4x512xf32>
    %167 = arith.subf %166, %143 : vector<4x512xf32>
    %cst_76 = arith.constant 0.571428597 : f32
    %168 = vector.broadcast %cst_76 : f32 to vector<4x512xf32>
    %169 = arith.mulf %167, %168 : vector<4x512xf32>
    %170 = arith.addf %143, %169 : vector<4x512xf32>
    %cst_77 = arith.constant 1.000000e+00 : f32
    %171 = vector.broadcast %cst_77 : f32 to vector<4x512xf32>
    %172 = arith.cmpf oge, %170, %171 : vector<4x512xf32>
    %cst_78 = arith.constant 0.000000e+00 : f32
    %173 = vector.broadcast %cst_78 : f32 to vector<4x512xf32>
    %174 = arith.select %172, %173, %170 : vector<4x512xi1>, vector<4x512xf32>
    %175 = arith.extui %172 : vector<4x512xi1> to vector<4x512xi32>
    %176 = arith.sitofp %175 : vector<4x512xi32> to vector<4x512xf32>
    %177 = arith.truncf %176 : vector<4x512xf32> to vector<4x512xbf16>
    %cst_79 = arith.constant dense<0.000000e+00> : vector<8x512xf32>
    %178 = tpu.matmul %0, %177, %cst_79 {dimension_numbers = #tpu.dot_dimension_numbers<[1], [0], [0], [1], [0, 0, 1, 1], [], []>} : vector<8x4xbf16>, vector<4x512xbf16>, vector<8x512xf32> -> vector<8x512xf32>
    %179 = arith.addf %178, %4 : vector<8x512xf32>
    %180 = arith.subf %179, %156 : vector<8x512xf32>
    %cst_80 = arith.constant 0.571428597 : f32
    %181 = vector.broadcast %cst_80 : f32 to vector<8x512xf32>
    %182 = arith.mulf %180, %181 : vector<8x512xf32>
    %183 = arith.addf %156, %182 : vector<8x512xf32>
    %cst_81 = arith.constant 1.000000e+00 : f32
    %184 = vector.broadcast %cst_81 : f32 to vector<8x512xf32>
    %185 = arith.cmpf oge, %183, %184 : vector<8x512xf32>
    %cst_82 = arith.constant 0.000000e+00 : f32
    %186 = vector.broadcast %cst_82 : f32 to vector<8x512xf32>
    %187 = arith.select %185, %186, %183 : vector<8x512xi1>, vector<8x512xf32>
    %188 = arith.extui %185 : vector<8x512xi1> to vector<8x512xi32>
    %189 = arith.sitofp %188 : vector<8x512xi32> to vector<8x512xf32>
    %190 = arith.truncf %189 : vector<8x512xf32> to vector<8x512xbf16>
    %cst_83 = arith.constant dense<0.000000e+00> : vector<4x512xf32>
    %191 = tpu.matmul %1, %190, %cst_83 {dimension_numbers = #tpu.dot_dimension_numbers<[1], [0], [0], [1], [0, 0, 1, 1], [], []>} : vector<4x8xbf16>, vector<8x512xbf16>, vector<4x512xf32> -> vector<4x512xf32>
    %192 = arith.addf %191, %7 : vector<4x512xf32>
    %c5_84 = arith.constant 5 : index
    %c0_85 = arith.constant 0 : index
    %c0_86 = arith.constant 0 : index
    %193 = vector.load %arg6[%c5_84, %c0_85, %c0_86] : memref<8x4x512xf32, #tpu.memory_space<vmem>>, vector<1x4x512xf32>
    %194 = vector.shape_cast %193 : vector<1x4x512xf32> to vector<4x512xf32>
    %195 = vector.shape_cast %192 : vector<4x512xf32> to vector<1x4x512xf32>
    tpu.vector_store %arg6[%c5_84, %c0_85, %c0_86], %195 {strides = array<i32>} : memref<8x4x512xf32, #tpu.memory_space<vmem>>, vector<1x4x512xf32>,
    %c6 = arith.constant 6 : index
    %c0_87 = arith.constant 0 : index
    %c0_88 = arith.constant 0 : index
    %196 = vector.load %arg1[%c6, %c0_87, %c0_88] : memref<8x4x512xf32, #tpu.memory_space<vmem>>, vector<1x4x512xf32>
    %197 = vector.shape_cast %196 : vector<1x4x512xf32> to vector<4x512xf32>
    %198 = arith.subf %197, %174 : vector<4x512xf32>
    %cst_89 = arith.constant 0.571428597 : f32
    %199 = vector.broadcast %cst_89 : f32 to vector<4x512xf32>
    %200 = arith.mulf %198, %199 : vector<4x512xf32>
    %201 = arith.addf %174, %200 : vector<4x512xf32>
    %cst_90 = arith.constant 1.000000e+00 : f32
    %202 = vector.broadcast %cst_90 : f32 to vector<4x512xf32>
    %203 = arith.cmpf oge, %201, %202 : vector<4x512xf32>
    %cst_91 = arith.constant 0.000000e+00 : f32
    %204 = vector.broadcast %cst_91 : f32 to vector<4x512xf32>
    %205 = arith.select %203, %204, %201 : vector<4x512xi1>, vector<4x512xf32>
    %206 = arith.extui %203 : vector<4x512xi1> to vector<4x512xi32>
    %207 = arith.sitofp %206 : vector<4x512xi32> to vector<4x512xf32>
    %208 = arith.truncf %207 : vector<4x512xf32> to vector<4x512xbf16>
    %cst_92 = arith.constant dense<0.000000e+00> : vector<8x512xf32>
    %209 = tpu.matmul %0, %208, %cst_92 {dimension_numbers = #tpu.dot_dimension_numbers<[1], [0], [0], [1], [0, 0, 1, 1], [], []>} : vector<8x4xbf16>, vector<4x512xbf16>, vector<8x512xf32> -> vector<8x512xf32>
    %210 = arith.addf %209, %4 : vector<8x512xf32>
    %211 = arith.subf %210, %187 : vector<8x512xf32>
    %cst_93 = arith.constant 0.571428597 : f32
    %212 = vector.broadcast %cst_93 : f32 to vector<8x512xf32>
    %213 = arith.mulf %211, %212 : vector<8x512xf32>
    %214 = arith.addf %187, %213 : vector<8x512xf32>
    %cst_94 = arith.constant 1.000000e+00 : f32
    %215 = vector.broadcast %cst_94 : f32 to vector<8x512xf32>
    %216 = arith.cmpf oge, %214, %215 : vector<8x512xf32>
    %cst_95 = arith.constant 0.000000e+00 : f32
    %217 = vector.broadcast %cst_95 : f32 to vector<8x512xf32>
    %218 = arith.select %216, %217, %214 : vector<8x512xi1>, vector<8x512xf32>
    %219 = arith.extui %216 : vector<8x512xi1> to vector<8x512xi32>
    %220 = arith.sitofp %219 : vector<8x512xi32> to vector<8x512xf32>
    %221 = arith.truncf %220 : vector<8x512xf32> to vector<8x512xbf16>
    %cst_96 = arith.constant dense<0.000000e+00> : vector<4x512xf32>
    %222 = tpu.matmul %1, %221, %cst_96 {dimension_numbers = #tpu.dot_dimension_numbers<[1], [0], [0], [1], [0, 0, 1, 1], [], []>} : vector<4x8xbf16>, vector<8x512xbf16>, vector<4x512xf32> -> vector<4x512xf32>
    %223 = arith.addf %222, %7 : vector<4x512xf32>
    %c6_97 = arith.constant 6 : index
    %c0_98 = arith.constant 0 : index
    %c0_99 = arith.constant 0 : index
    %224 = vector.load %arg6[%c6_97, %c0_98, %c0_99] : memref<8x4x512xf32, #tpu.memory_space<vmem>>, vector<1x4x512xf32>
    %225 = vector.shape_cast %224 : vector<1x4x512xf32> to vector<4x512xf32>
    %226 = vector.shape_cast %223 : vector<4x512xf32> to vector<1x4x512xf32>
    tpu.vector_store %arg6[%c6_97, %c0_98, %c0_99], %226 {strides = array<i32>} : memref<8x4x512xf32, #tpu.memory_space<vmem>>, vector<1x4x512xf32>,
    %c7 = arith.constant 7 : index
    %c0_100 = arith.constant 0 : index
    %c0_101 = arith.constant 0 : index
    %227 = vector.load %arg1[%c7, %c0_100, %c0_101] : memref<8x4x512xf32, #tpu.memory_space<vmem>>, vector<1x4x512xf32>
    %228 = vector.shape_cast %227 : vector<1x4x512xf32> to vector<4x512xf32>
    %229 = arith.subf %228, %205 : vector<4x512xf32>
    %cst_102 = arith.constant 0.571428597 : f32
    %230 = vector.broadcast %cst_102 : f32 to vector<4x512xf32>
    %231 = arith.mulf %229, %230 : vector<4x512xf32>
    %232 = arith.addf %205, %231 : vector<4x512xf32>
    %cst_103 = arith.constant 1.000000e+00 : f32
    %233 = vector.broadcast %cst_103 : f32 to vector<4x512xf32>
    %234 = arith.cmpf oge, %232, %233 : vector<4x512xf32>
    %235 = arith.extui %234 : vector<4x512xi1> to vector<4x512xi32>
    %236 = arith.sitofp %235 : vector<4x512xi32> to vector<4x512xf32>
    %237 = arith.truncf %236 : vector<4x512xf32> to vector<4x512xbf16>
    %cst_104 = arith.constant dense<0.000000e+00> : vector<8x512xf32>
    %238 = tpu.matmul %0, %237, %cst_104 {dimension_numbers = #tpu.dot_dimension_numbers<[1], [0], [0], [1], [0, 0, 1, 1], [], []>} : vector<8x4xbf16>, vector<4x512xbf16>, vector<8x512xf32> -> vector<8x512xf32>
    %239 = arith.addf %238, %4 : vector<8x512xf32>
    %240 = arith.subf %239, %218 : vector<8x512xf32>
    %cst_105 = arith.constant 0.571428597 : f32
    %241 = vector.broadcast %cst_105 : f32 to vector<8x512xf32>
    %242 = arith.mulf %240, %241 : vector<8x512xf32>
    %243 = arith.addf %218, %242 : vector<8x512xf32>
    %cst_106 = arith.constant 1.000000e+00 : f32
    %244 = vector.broadcast %cst_106 : f32 to vector<8x512xf32>
    %245 = arith.cmpf oge, %243, %244 : vector<8x512xf32>
    %246 = arith.extui %245 : vector<8x512xi1> to vector<8x512xi32>
    %247 = arith.sitofp %246 : vector<8x512xi32> to vector<8x512xf32>
    %248 = arith.truncf %247 : vector<8x512xf32> to vector<8x512xbf16>
    %cst_107 = arith.constant dense<0.000000e+00> : vector<4x512xf32>
    %249 = tpu.matmul %1, %248, %cst_107 {dimension_numbers = #tpu.dot_dimension_numbers<[1], [0], [0], [1], [0, 0, 1, 1], [], []>} : vector<4x8xbf16>, vector<8x512xbf16>, vector<4x512xf32> -> vector<4x512xf32>
    %250 = arith.addf %249, %7 : vector<4x512xf32>
    %c7_108 = arith.constant 7 : index
    %c0_109 = arith.constant 0 : index
    %c0_110 = arith.constant 0 : index
    %251 = vector.load %arg6[%c7_108, %c0_109, %c0_110] : memref<8x4x512xf32, #tpu.memory_space<vmem>>, vector<1x4x512xf32>
    %252 = vector.shape_cast %251 : vector<1x4x512xf32> to vector<4x512xf32>
    %253 = vector.shape_cast %250 : vector<4x512xf32> to vector<1x4x512xf32>
    tpu.vector_store %arg6[%c7_108, %c0_109, %c0_110], %253 {strides = array<i32>} : memref<8x4x512xf32, #tpu.memory_space<vmem>>, vector<1x4x512xf32>,
    return
  }
  func.func @transform_0(%arg0: i32) -> (i32, i32, i32) {
    %c0_i32 = arith.constant 0 : i32
    %c0_i32_0 = arith.constant 0 : i32
    %c0_i32_1 = arith.constant 0 : i32
    return %c0_i32, %c0_i32_0, %arg0 : i32, i32, i32
  }
  func.func @transform_1(%arg0: i32) -> (i32, i32) {
    %c0_i32 = arith.constant 0 : i32
    %c0_i32_0 = arith.constant 0 : i32
    %c0_i32_1 = arith.constant 0 : i32
    return %c0_i32, %c0_i32_0 : i32, i32
  }
  func.func @transform_2(%arg0: i32) -> (i32, i32) {
    %c0_i32 = arith.constant 0 : i32
    %c0_i32_0 = arith.constant 0 : i32
    %c0_i32_1 = arith.constant 0 : i32
    return %c0_i32, %c0_i32_0 : i32, i32
  }
  func.func @transform_3(%arg0: i32) -> (i32, i32) {
    %c0_i32 = arith.constant 0 : i32
    %c0_i32_0 = arith.constant 0 : i32
    %c0_i32_1 = arith.constant 0 : i32
    return %c0_i32, %c0_i32_0 : i32, i32
  }
  func.func @transform_4(%arg0: i32) -> (i32, i32) {
    %c0_i32 = arith.constant 0 : i32
    %c0_i32_0 = arith.constant 0 : i32
    %c0_i32_1 = arith.constant 0 : i32
    return %c0_i32, %c0_i32_0 : i32, i32
  }
  func.func @transform_5(%arg0: i32) -> (i32, i32, i32) {
    %c0_i32 = arith.constant 0 : i32
    %c0_i32_0 = arith.constant 0 : i32
    %c0_i32_1 = arith.constant 0 : i32
    return %c0_i32, %c0_i32_0, %arg0 : i32, i32, i32
  }
}

</mosaic_0001>

<bundles_post_ra>
// kernel: tpu_custom_call.1
= control target key start
LH: loop header
LB: loop body
LE: loop exit
PB: predicated region body
PF: predicated region fallthrough
CT: control target
= control target key end

     0   :  { %10 = vsyncpa [#allocation3], 0  ;;  %s2841_s0 = inlined_call_operand.hbm [shape: f32[8,4,512], index: 0, kind: input, shape index: {}]   ;;  %s2842_s1 = inlined_call_operand.vmem [shape: bf16[8,4], index: 1, kind: input, shape index: {}]   ;;  %s2843_s2 = inlined_call_operand.vmem [shape: f32[8,1], index: 2, kind: input, shape index: {}]   ;;  %s2844_s3 = inlined_call_operand.vmem [shape: bf16[4,8], index: 3, kind: input, shape index: {}]   ;;  %s2845_s4 = inlined_call_operand.vmem [shape: f32[4,1], index: 4, kind: input, shape index: {}]   ;;  %s2846_s5 = inlined_call_operand.hbm [shape: f32[8,4,512], index: 5, kind: output, shape index: {}]  }
   0x1   :  { %11 = vsyncpa [#allocation4], 0  ;;  %s2296_s18 = smov [#allocation2]   ;;  %s2248_s22 = scalar_lea.hbm %s2841_s0, 2048 }
   0x2   :  { %s17_s19 = sshll.u32 %s2296_s18, 4  ;;  %p2249_p0 = scmp.ne.s32.totalorder %s2841_s0, %s2248_s22  ;;  %s18_s19 = int_to_ptr.vmem [resolvable:$true] %s17_s19 }
   0x3   :  { %p2252_p1 = scmp.lt.u32.totalorder %s2248_s22, %s2841_s0 }
   0x5   :  { %p2254_p2 = pnand %p2252_p1, %p2249_p0 }
   0x7   :  { %2257 = shalt.err (!%p2254_p2)
}
   0x8   :  { %s2258_s27 = scalar_lea.vmem %s18_s19, 2048  ;;  %p2263_p4 = scmp.lt.s32.totalorder %s18_s19, %s18_s19 }
   0x9   :  { %p2259_p3 = scmp.ne.s32.totalorder %s18_s19, %s2258_s27  ;;  %p2264_p5 = scmp.lt.s32.totalorder %s2258_s27, %s2258_s27 }
   0xb   :  { %p2265_p6 = por %p2264_p5, %p2263_p4 }
   0xd   :  { %p2266_p7 = pnand %p2265_p6, %p2259_p3 }
   0xf   :  { %2269 = shalt.err (!%p2266_p7)
}
  0x10   :  { %s2297_s28 = smov 256   ;;  %s2298_s29 = smov 16  }
  0x11   :  { %23 = dma.hbm_to_vmem [thread:$0]  %s2841_s0, 2048, %s18_s19, [#allocation3], %s2297_s28, %s2297_s28, %s2298_s29  }
  0x12   :  { %2292 = dma.done.wait [#allocation3], 2048  }
  0x13   :  { %2293 = vsyncadd [#allocation3], 4294965248  ;;  %v2299_v0 = vmov 0   ;;  %v50_v1 = vld [vmem:[#allocation2] sm:$0xff]  ;;  %v51_v3 = vld [vmem:[#allocation2 + $0x8] sm:$0xff]  ;;  %v2300_v7 = vmov 0.0  }
  0x14   :  { %123 = vmatprep.mubr.bf16.mxu0 %v2299_v0  ;;  %164 = vmatprep.mubr.bf16.mxu1 %v2299_v0  ;;  %v52_v2 = vmul.f32 0.5714286, %v50_v1  ;;  %v53_v4 = vmul.f32 0.5714286, %v51_v3  ;;  %v38_v5 = vld [vmem:[%s2843_s2] sm:$0xff]  ;;  %vm78_vm2 = vcmask 1041408  }
  0x15   :  { %2245 = vset.pattern.permute.xlu0 %v2299_v0  ;;  %v44_v9 = vld [vmem:[%s2845_s4] sm:$0xf]  ;;  %vm74_vm3 = vcmask 31744   ;;  %v311_v21 = vld [vmem:[#allocation2 + $0x10] sm:$0xff]  ;;  %v312_v22 = vld [vmem:[#allocation2 + $0x18] sm:$0xff]  ;;  %vm205_vm6 = vcmask 1043456  }
  0x16   :  { %vm56_vm0 = vcmp.ge.f32.partialorder %v52_v2, 1.0  ;;  %41 = vperm.xlu0 %2245, %v38_v5   ;;  %vm57_vm1 = vcmp.ge.f32.partialorder %v53_v4, 1.0  ;;  %v2365_v20 = vld [vmem:[%s2842_s1] sm:$0xf]  ;;  %vm201_vm11 = vcmask 64512  }
  0x17   :  { %v58_v6 = vsel %vm56_vm0, 0.0, %v52_v2  ;;  %v2127_v8 = vsel %vm56_vm0, 1.0, %v2300_v7  ;;  %v59_v11 = vsel %vm57_vm1, 0.0, %v53_v4  ;;  %v2128_v12 = vsel %vm57_vm1, 1.0, %v2300_v7  ;;  %v2410_v5 = vld [vmem:[%s2844_s3] sm:$0x3] }
  0x18   :  { %v66_v10 = vcombine.high %v2127_v8, %v2127_v8  ;;  %v67_v13 = vcombine.high %v2128_v12, %v2128_v12  ;;  %v70_v14 = vpack.c.bf16 %v2127_v8, %v2127_v8  ;;  %v72_v15 = vpack.c.bf16 %v2128_v12, %v2128_v12  ;;  %v570_v12 = vld [vmem:[#allocation2 + $0x28] sm:$0xff] }
  0x19   :  { %v313_v23 = vsub.f32 %v311_v21, %v58_v6  ;;  %v314_v24 = vsub.f32 %v312_v22, %v59_v11 }
  0x1a   :  { %v71_v16 = vpack.c.bf16 %v66_v10, %v66_v10  ;;  %47 = vperm.xlu0 %2245, %v44_v9   ;;  %v73_v17 = vpack.c.bf16 %v67_v13, %v67_v13  ;;  %v80_v18 = vsel %vm78_vm2, %v70_v14, 0  ;;  %v86_v19 = vsel %vm78_vm2, %v72_v15, 0  ;;  %v569_v10 = vld [vmem:[#allocation2 + $0x20] sm:$0xff] }
  0x1b   :  { %v315_v25 = vmul.f32 0.5714286, %v313_v23  ;;  %v316_v26 = vmul.f32 0.5714286, %v314_v24 }
  0x1c   :  { %2129 = vmatprep.subr.msk.bf16.mxu0 %vm78_vm2, %v71_v16  ;;  %2131 = vmatprep.subr.msk.bf16.mxu1 %vm78_vm2, %v73_v17 }
  0x1d   :  { %92 = vmatpush1.bf16.msra.mxu0 %v80_v18  ;;  %133 = vmatpush1.bf16.msra.mxu1 %v86_v19  ;;  %v2373_v27 = vadd.f32 %v315_v25, %v58_v6  ;;  %v2375_v28 = vadd.f32 %v316_v26, %v59_v11 }
  0x1f   :  { %vm319_vm4 = vcmp.ge.f32.partialorder %v2373_v27, 1.0  ;;  %vm320_vm5 = vcmp.ge.f32.partialorder %v2375_v28, 1.0 }
  0x20   :  { %2130 = vmatmul.mubr.msk.bf16.vlgmr.msra.gmra.mrb[0].mxu0 %vm74_vm3, %v2365_v20  ;;  %2132 = vmatmul.mubr.msk.bf16.vlgmr.msra.gmra.mrb[0].mxu1 %vm74_vm3, %v2365_v20  ;;  %v2141_v34 = vsel %vm319_vm4, 1.0, %v2300_v7  ;;  %v2142_v39 = vsel %vm320_vm5, 1.0, %v2300_v7  ;;  %v321_v9 = vsel %vm319_vm4, 0.0, %v2373_v27  ;;  %v322_v11 = vsel %vm320_vm5, 0.0, %v2375_v28 }
  0x21   :  { %250 = vmatprep.mubr.bf16.mxu0 %v2299_v0  ;;  %291 = vmatprep.mubr.bf16.mxu1 %v2299_v0  ;;  %v329_v47 = vcombine.high %v2141_v34, %v2141_v34  ;;  %v330_v49 = vcombine.high %v2142_v39, %v2142_v39  ;;  %v333_v50 = vpack.c.bf16 %v2141_v34, %v2141_v34 }
  0x22   :  { %v335_v4 = vpack.c.bf16 %v2142_v39, %v2142_v39  ;;  %v571_v13 = vsub.f32 %v569_v10, %v321_v9  ;;  %v572_v14 = vsub.f32 %v570_v12, %v322_v11 }
  0x23   :  { %v334_v59 = vpack.c.bf16 %v329_v47, %v329_v47  ;;  %v336_v3 = vpack.c.bf16 %v330_v49, %v330_v49  ;;  %v338_v6 = vsel %vm78_vm2, %v333_v50, 0 }
  0x24   :  { %v344_v8 = vsel %vm78_vm2, %v335_v4, 0  ;;  %v573_v15 = vmul.f32 0.5714286, %v571_v13  ;;  %v574_v16 = vmul.f32 0.5714286, %v572_v14 }
  0x26   :  { %v575_v17 = vadd.f32 %v573_v15, %v321_v9  ;;  %v576_v18 = vadd.f32 %v574_v16, %v322_v11 }
  0x28   :  { %vm577_vm12 = vcmp.ge.f32.partialorder %v575_v17, 1.0  ;;  %vm578_vm13 = vcmp.ge.f32.partialorder %v576_v18, 1.0 }
  0x29   :  { %v2435_v19 = vsel %vm577_vm12, 0.0, %v575_v17  ;;  %v2438_v21 = vsel %vm578_vm13, 0.0, %v576_v18  ;;  %v2156_v47 = vsel %vm578_vm13, 1.0, %v2300_v7 }
  0x2a   :  { %v593_v9 = vpack.c.bf16 %v2156_v47, %v2156_v47 }
  0x95   :  { %v2379_v29 = vpop.permute.xlu0 %41 }
  0x99   :  { %v2440_v22 = vpop.permute.xlu0 %47 }
  0xf3   :  { %v125_v30 = vpop.f32.mrb[0].mxu0  ;;  %v166_v32 = vpop.f32.mrb[0].mxu1 }
  0xf4   :  { %v126_v31 = vadd.f32 %v125_v30, %v2379_v29  ;;  %v127_v33 = vpop.f32.mrb[1].mxu0  ;;  %v167_v35 = vadd.f32 %v166_v32, %v2379_v29  ;;  %v168_v37 = vpop.f32.mrb[1].mxu1 }
  0xf5   :  { %v128_v36 = vadd.f32 %v127_v33, %v2379_v29  ;;  %v129_v38 = vpop.f32.mrb[2].mxu0  ;;  %v169_v41 = vadd.f32 %v168_v37, %v2379_v29  ;;  %v170_v42 = vpop.f32.mrb[2].mxu1 }
  0xf6   :  { %v173_v40 = vmul.f32 0.5714286, %v126_v31  ;;  %v130_v43 = vpop.f32.mrb[3].mxu0  ;;  %v175_v44 = vmul.f32 0.5714286, %v167_v35  ;;  %v171_v46 = vpop.f32.mrb[3].mxu1 }
  0xf7   :  { %v174_v45 = vmul.f32 0.5714286, %v128_v36  ;;  %v176_v48 = vmul.f32 0.5714286, %v169_v41  ;;  %v2155_v46 = vsel %vm577_vm12, 1.0, %v2300_v7 }
  0xf8   :  { %vm181_vm7 = vcmp.ge.f32.partialorder %v173_v40, 1.0  ;;  %vm183_vm8 = vcmp.ge.f32.partialorder %v175_v44, 1.0 }
  0xf9   :  { %v2391_v51 = vsel %vm181_vm7, 0.0, %v173_v40  ;;  %v2133_v52 = vsel %vm181_vm7, 1.0, %v2300_v7  ;;  %vm182_vm9 = vcmp.ge.f32.partialorder %v174_v45, 1.0  ;;  %v2394_v54 = vsel %vm183_vm8, 0.0, %v175_v44 }
  0xfa   :  { %v197_v53 = vpack.c.bf16 %v2133_v52, %v2133_v52  ;;  %v2135_v55 = vsel %vm183_vm8, 1.0, %v2300_v7  ;;  %v2397_v56 = vsel %vm182_vm9, 0.0, %v174_v45  ;;  %v2134_v58 = vsel %vm182_vm9, 1.0, %v2300_v7 }
  0xfb   :  { %v199_v57 = vpack.c.bf16 %v2135_v55, %v2135_v55  ;;  %vm184_vm10 = vcmp.ge.f32.partialorder %v176_v48, 1.0  ;;  %v198_v60 = vpack.c.bf16 %v2134_v58, %v2134_v58 }
  0xfc   :  { %v2400_v61 = vsel %vm184_vm10, 0.0, %v176_v48  ;;  %v2136_v62 = vsel %vm184_vm10, 1.0, %v2300_v7  ;;  %v207_v63 = vsel %vm205_vm6, %v197_v53, 0 }
  0xfd   :  { %v200_v1 = vpack.c.bf16 %v2136_v62, %v2136_v62  ;;  %v213_v2 = vsel %vm205_vm6, %v199_v57, 0  ;;  %2137 = vmatprep.subr.msk.bf16.mxu0 %vm205_vm6, %v198_v60  ;;  %v587_v60 = vcombine.high %v2155_v46, %v2155_v46  ;;  %v588_v62 = vcombine.high %v2156_v47, %v2156_v47 }
  0xfe   :  { %219 = vmatpush1.bf16.msra.mxu0 %v207_v63 }
  0xff   :  { %2139 = vmatprep.subr.msk.bf16.mxu1 %vm205_vm6, %v200_v1  ;;  %2143 = vmatprep.subr.msk.bf16.mxu0 %vm78_vm2, %v334_v59  ;;  %v592_v11 = vpack.c.bf16 %v587_v60, %v587_v60  ;;  %v594_v12 = vpack.c.bf16 %v588_v62, %v588_v62 }
 0x100   :  { %260 = vmatpush1.bf16.msra.mxu1 %v213_v2 }
 0x101   :  { %2145 = vmatprep.subr.msk.bf16.mxu1 %vm78_vm2, %v336_v3  ;;  %2138 = vmatmul.mubr.msk.bf16.vlgmr.msra.gmra.mrb[4].mxu0 %vm201_vm11, %v2410_v5 }
 0x102   :  { %350 = vmatpush1.bf16.msra.mxu0 %v338_v6  ;;  %381 = vmatprep.mubr.bf16.mxu0 %v2299_v0 }
 0x103   :  { %2140 = vmatmul.mubr.msk.bf16.vlgmr.msra.gmra.mrb[4].mxu1 %vm201_vm11, %v2410_v5 }
 0x104   :  { %391 = vmatpush1.bf16.msra.mxu1 %v344_v8  ;;  %422 = vmatprep.mubr.bf16.mxu1 %v2299_v0  ;;  %v591_v8 = vpack.c.bf16 %v2155_v46, %v2155_v46 }
 0x109   :  { %2144 = vmatmul.mubr.msk.bf16.vlgmr.msra.gmra.mrb[8].mxu0 %vm74_vm3, %v2365_v20 }
 0x10a   :  { %507 = vmatprep.mubr.bf16.mxu0 %v2299_v0 }
 0x10b   :  { %2146 = vmatmul.mubr.msk.bf16.vlgmr.msra.gmra.mrb[8].mxu1 %vm74_vm3, %v2365_v20 }
 0x10c   :  { %548 = vmatprep.mubr.bf16.mxu1 %v2299_v0 }
 0x1d4   :  { %v252_v23 = vpop.f32.mrb[4].mxu0 }
 0x1d5   :  { %v253_v24 = vadd.f32 %v252_v23, %v2440_v22  ;;  %v254_v26 = vpop.f32.mrb[5].mxu0 }
 0x1d6   :  { %v293_v25 = vpop.f32.mrb[4].mxu1  ;;  %v255_v28 = vadd.f32 %v254_v26, %v2440_v22  ;;  %v256_v31 = vpop.f32.mrb[6].mxu0 }
 0x1d7   :  { %v294_v27 = vadd.f32 %v293_v25, %v2440_v22  ;;  %v295_v30 = vpop.f32.mrb[5].mxu1  ;;  %v257_v34 = vpop.f32.mrb[7].mxu0  ;;  %v828_v31 = vld [vmem:[#allocation2 + $0x38] sm:$0xff] }
 0x1d8   :  { %v296_v32 = vadd.f32 %v295_v30, %v2440_v22  ;;  %v297_v33 = vpop.f32.mrb[6].mxu1  ;;  %v304_v35 = vcombine.low %v253_v24, %v255_v28  ;;  %v602_v28 = vsel %vm78_vm2, %v593_v9, 0  ;;  %v827_v30 = vld [vmem:[#allocation2 + $0x30] sm:$0xff] }
 0x1d9   :  { %v298_v36 = vpop.f32.mrb[7].mxu1  ;;  %v830_v33 = vsub.f32 %v828_v31, %v2438_v21 }
 0x1da   :  { %v305_v37 = vcombine.low %v294_v27, %v296_v32  ;;  %308 = vst [vmem:[#allocation5] sm:$0xff] %v304_v35  ;;  %v596_v27 = vsel %vm78_vm2, %v591_v8, 0  ;;  %v829_v32 = vsub.f32 %v827_v30, %v2435_v19 }
 0x1db   :  { %v832_v35 = vmul.f32 0.5714286, %v830_v33 }
 0x1dc   :  { %309 = vst [vmem:[#allocation5 + $0x8] sm:$0xff] %v305_v37  ;;  %v383_v38 = vpop.f32.mrb[8].mxu0  ;;  %v831_v34 = vmul.f32 0.5714286, %v829_v32 }
 0x1dd   :  { %v384_v39 = vadd.f32 %v383_v38, %v2379_v29  ;;  %v385_v41 = vpop.f32.mrb[9].mxu0  ;;  %v834_v37 = vadd.f32 %v832_v35, %v2438_v21 }
 0x1de   :  { %v424_v40 = vpop.f32.mrb[8].mxu1  ;;  %v386_v43 = vadd.f32 %v385_v41, %v2379_v29  ;;  %v387_v45 = vpop.f32.mrb[10].mxu0  ;;  %v833_v36 = vadd.f32 %v831_v34, %v2435_v19 }
 0x1df   :  { %v425_v42 = vadd.f32 %v424_v40, %v2379_v29  ;;  %v426_v44 = vpop.f32.mrb[9].mxu1  ;;  %v431_v48 = vsub.f32 %v384_v39, %v2391_v51  ;;  %v388_v52 = vpop.f32.mrb[11].mxu0  ;;  %vm836_vm5 = vcmp.ge.f32.partialorder %v834_v37, 1.0 }
 0x1e0   :  { %v427_v49 = vadd.f32 %v426_v44, %v2379_v29  ;;  %v428_v50 = vpop.f32.mrb[10].mxu1  ;;  %v432_v55 = vsub.f32 %v386_v43, %v2397_v56  ;;  %vm835_vm4 = vcmp.ge.f32.partialorder %v833_v36, 1.0  ;;  %v2502_v39 = vsel %vm836_vm5, 0.0, %v834_v37 }
 0x1e1   :  { %v433_v53 = vsub.f32 %v425_v42, %v2394_v54  ;;  %v429_v57 = vpop.f32.mrb[11].mxu1  ;;  %v435_v58 = vmul.f32 0.5714286, %v431_v48  ;;  %v2499_v38 = vsel %vm835_vm4, 0.0, %v833_v36 }
 0x1e2   :  { %v434_v59 = vsub.f32 %v427_v49, %v2400_v61  ;;  %v436_v1 = vmul.f32 0.5714286, %v432_v55 }
 0x1e3   :  { %v437_v63 = vmul.f32 0.5714286, %v433_v53  ;;  %v439_v2 = vadd.f32 %v435_v58, %v2391_v51 }
 0x1e4   :  { %v438_v3 = vmul.f32 0.5714286, %v434_v59  ;;  %v440_v6 = vadd.f32 %v436_v1, %v2397_v56  ;;  %v2169_v1 = vsel %vm835_vm4, 1.0, %v2300_v7 }
 0x1e5   :  { %v441_v4 = vadd.f32 %v437_v63, %v2394_v54  ;;  %vm443_vm14 = vcmp.ge.f32.partialorder %v439_v2, 1.0 }
 0x1e6   :  { %v442_v10 = vadd.f32 %v438_v3, %v2400_v61  ;;  %vm444_vm15 = vcmp.ge.f32.partialorder %v440_v6, 1.0  ;;  %v2147_v13 = vsel %vm443_vm14, 1.0, %v2300_v7  ;;  %v2463_v14 = vsel %vm443_vm14, 0.0, %v439_v2 }
 0x1e7   :  { %vm445_vm0 = vcmp.ge.f32.partialorder %v441_v4, 1.0  ;;  %v2148_v51 = vsel %vm444_vm15, 1.0, %v2300_v7  ;;  %v459_v15 = vpack.c.bf16 %v2147_v13, %v2147_v13  ;;  %v2471_v24 = vsel %vm444_vm15, 0.0, %v440_v6 }
 0x1e8   :  { %vm446_vm1 = vcmp.ge.f32.partialorder %v442_v10, 1.0  ;;  %v2149_v54 = vsel %vm445_vm0, 1.0, %v2300_v7  ;;  %v460_v56 = vpack.c.bf16 %v2148_v51, %v2148_v51  ;;  %v2468_v61 = vsel %vm445_vm0, 0.0, %v441_v4 }
 0x1e9   :  { %v2150_v16 = vsel %vm446_vm1, 1.0, %v2300_v7  ;;  %v461_v17 = vpack.c.bf16 %v2149_v54, %v2149_v54  ;;  %v464_v23 = vsel %vm205_vm6, %v459_v15, 0  ;;  %v2473_v25 = vsel %vm446_vm1, 0.0, %v442_v10 }
 0x1ea   :  { %v462_v18 = vpack.c.bf16 %v2150_v16, %v2150_v16  ;;  %2151 = vmatprep.subr.msk.bf16.mxu0 %vm205_vm6, %v460_v56  ;;  %v2170_v2 = vsel %vm836_vm5, 1.0, %v2300_v7  ;;  %v845_v51 = vcombine.high %v2169_v1, %v2169_v1 }
 0x1eb   :  { %v470_v26 = vsel %vm205_vm6, %v461_v17, 0  ;;  %476 = vmatpush1.bf16.msra.mxu0 %v464_v23  ;;  %v846_v15 = vcombine.high %v2170_v2, %v2170_v2 }
 0x1ec   :  { %2153 = vmatprep.subr.msk.bf16.mxu1 %vm205_vm6, %v462_v18  ;;  %2157 = vmatprep.subr.msk.bf16.mxu0 %vm78_vm2, %v592_v11  ;;  %v850_v30 = vpack.c.bf16 %v845_v51, %v845_v51 }
 0x1ed   :  { %517 = vmatpush1.bf16.msra.mxu1 %v470_v26  ;;  %v849_v26 = vpack.c.bf16 %v2169_v1, %v2169_v1  ;;  %v852_v31 = vpack.c.bf16 %v846_v15, %v846_v15 }
 0x1ee   :  { %2159 = vmatprep.subr.msk.bf16.mxu1 %vm78_vm2, %v594_v12  ;;  %2152 = vmatmul.mubr.msk.bf16.vlgmr.msra.gmra.mrb[12].mxu0 %vm201_vm11, %v2410_v5 }
 0x1ef   :  { %608 = vmatpush1.bf16.msra.mxu0 %v596_v27  ;;  %639 = vmatprep.mubr.bf16.mxu0 %v2299_v0  ;;  %v851_v27 = vpack.c.bf16 %v2170_v2, %v2170_v2 }
 0x1f0   :  { %2154 = vmatmul.mubr.msk.bf16.vlgmr.msra.gmra.mrb[12].mxu1 %vm201_vm11, %v2410_v5 }
 0x1f1   :  { %649 = vmatpush1.bf16.msra.mxu1 %v602_v28  ;;  %680 = vmatprep.mubr.bf16.mxu1 %v2299_v0 }
 0x1f6   :  { %2158 = vmatmul.mubr.msk.bf16.vlgmr.msra.gmra.mrb[16].mxu0 %vm74_vm3, %v2365_v20 }
 0x1f7   :  { %765 = vmatprep.mubr.bf16.mxu0 %v2299_v0 }
 0x1f8   :  { %2160 = vmatmul.mubr.msk.bf16.vlgmr.msra.gmra.mrb[16].mxu1 %vm74_vm3, %v2365_v20 }
 0x1f9   :  { %806 = vmatprep.mubr.bf16.mxu1 %v2299_v0 }
 0x2c1   :  { %v509_v40 = vpop.f32.mrb[12].mxu0 }
 0x2c2   :  { %v510_v41 = vadd.f32 %v509_v40, %v2440_v22  ;;  %v511_v43 = vpop.f32.mrb[13].mxu0 }
 0x2c3   :  { %v550_v42 = vpop.f32.mrb[12].mxu1  ;;  %v512_v45 = vadd.f32 %v511_v43, %v2440_v22  ;;  %v513_v46 = vpop.f32.mrb[14].mxu0 }
 0x2c4   :  { %v551_v44 = vadd.f32 %v550_v42, %v2440_v22  ;;  %v552_v19 = vpop.f32.mrb[13].mxu1  ;;  %v514_v48 = vpop.f32.mrb[15].mxu0  ;;  %v1086_v46 = vld [vmem:[#allocation2 + $0x48] sm:$0xff] }
 0x2c5   :  { %v553_v21 = vadd.f32 %v552_v19, %v2440_v22  ;;  %v554_v47 = vpop.f32.mrb[14].mxu1  ;;  %v561_v49 = vcombine.low %v510_v41, %v512_v45  ;;  %v860_v45 = vsel %vm78_vm2, %v851_v27, 0  ;;  %v1085_v19 = vld [vmem:[#allocation2 + $0x40] sm:$0xff] }
 0x2c6   :  { %v555_v50 = vpop.f32.mrb[15].mxu1  ;;  %v1088_v47 = vsub.f32 %v1086_v46, %v2502_v39 }
 0x2c7   :  { %v562_v52 = vcombine.low %v551_v44, %v553_v21  ;;  %566 = vst [vmem:[#allocation5 + $0x10] sm:$0xff] %v561_v49  ;;  %v854_v44 = vsel %vm78_vm2, %v849_v26, 0  ;;  %v1087_v21 = vsub.f32 %v1085_v19, %v2499_v38 }
 0x2c8   :  { %v1090_v49 = vmul.f32 0.5714286, %v1088_v47 }
 0x2c9   :  { %567 = vst [vmem:[#allocation5 + $0x18] sm:$0xff] %v562_v52  ;;  %v641_v53 = vpop.f32.mrb[16].mxu0  ;;  %v1089_v48 = vmul.f32 0.5714286, %v1087_v21 }
 0x2ca   :  { %v642_v55 = vadd.f32 %v641_v53, %v2379_v29  ;;  %v643_v58 = vpop.f32.mrb[17].mxu0  ;;  %v1092_v52 = vadd.f32 %v1090_v49, %v2502_v39 }
 0x2cb   :  { %v682_v57 = vpop.f32.mrb[16].mxu1  ;;  %v644_v60 = vadd.f32 %v643_v58, %v2379_v29  ;;  %v645_v63 = vpop.f32.mrb[18].mxu0  ;;  %v1091_v50 = vadd.f32 %v1089_v48, %v2499_v38 }
 0x2cc   :  { %v683_v59 = vadd.f32 %v682_v57, %v2379_v29  ;;  %v684_v62 = vpop.f32.mrb[17].mxu1  ;;  %v689_v3 = vsub.f32 %v642_v55, %v2463_v14  ;;  %v646_v8 = vpop.f32.mrb[19].mxu0  ;;  %vm1094_vm13 = vcmp.ge.f32.partialorder %v1092_v52, 1.0 }
 0x2cd   :  { %v685_v4 = vadd.f32 %v684_v62, %v2379_v29  ;;  %v686_v6 = vpop.f32.mrb[18].mxu1  ;;  %v690_v10 = vsub.f32 %v644_v60, %v2471_v24  ;;  %vm1093_vm12 = vcmp.ge.f32.partialorder %v1091_v50, 1.0  ;;  %v2564_v55 = vsel %vm1094_vm13, 0.0, %v1092_v52 }
 0x2ce   :  { %v691_v9 = vsub.f32 %v683_v59, %v2468_v61  ;;  %v687_v11 = vpop.f32.mrb[19].mxu1  ;;  %v693_v12 = vmul.f32 0.5714286, %v689_v3  ;;  %v2561_v53 = vsel %vm1093_vm12, 0.0, %v1091_v50 }
 0x2cf   :  { %v692_v13 = vsub.f32 %v685_v4, %v2473_v25  ;;  %v694_v56 = vmul.f32 0.5714286, %v690_v10 }
 0x2d0   :  { %v695_v54 = vmul.f32 0.5714286, %v691_v9  ;;  %v697_v16 = vadd.f32 %v693_v12, %v2463_v14 }
 0x2d1   :  { %v696_v17 = vmul.f32 0.5714286, %v692_v13  ;;  %v698_v23 = vadd.f32 %v694_v56, %v2471_v24  ;;  %v2183_v56 = vsel %vm1093_vm12, 1.0, %v2300_v7 }
 0x2d2   :  { %v699_v18 = vadd.f32 %v695_v54, %v2468_v61  ;;  %vm701_vm7 = vcmp.ge.f32.partialorder %v697_v16, 1.0 }
 0x2d3   :  { %v700_v28 = vadd.f32 %v696_v17, %v2473_v25  ;;  %vm702_vm9 = vcmp.ge.f32.partialorder %v698_v23, 1.0  ;;  %v2161_v32 = vsel %vm701_vm7, 1.0, %v2300_v7  ;;  %v2525_v33 = vsel %vm701_vm7, 0.0, %v697_v16 }
 0x2d4   :  { %vm703_vm8 = vcmp.ge.f32.partialorder %v699_v18, 1.0  ;;  %v2162_v14 = vsel %vm702_vm9, 1.0, %v2300_v7  ;;  %v717_v34 = vpack.c.bf16 %v2161_v32, %v2161_v32  ;;  %v2533_v41 = vsel %vm702_vm9, 0.0, %v698_v23 }
 0x2d5   :  { %vm704_vm10 = vcmp.ge.f32.partialorder %v700_v28, 1.0  ;;  %v2163_v61 = vsel %vm703_vm8, 1.0, %v2300_v7  ;;  %v718_v35 = vpack.c.bf16 %v2162_v14, %v2162_v14  ;;  %v2530_v37 = vsel %vm703_vm8, 0.0, %v699_v18 }
 0x2d6   :  { %v2164_v24 = vsel %vm704_vm10, 1.0, %v2300_v7  ;;  %v719_v36 = vpack.c.bf16 %v2163_v61, %v2163_v61  ;;  %v722_v40 = vsel %vm205_vm6, %v717_v34, 0  ;;  %v2535_v42 = vsel %vm704_vm10, 0.0, %v700_v28 }
 0x2d7   :  { %v720_v25 = vpack.c.bf16 %v2164_v24, %v2164_v24  ;;  %2165 = vmatprep.subr.msk.bf16.mxu0 %vm205_vm6, %v718_v35  ;;  %v2184_v16 = vsel %vm1094_vm13, 1.0, %v2300_v7  ;;  %v1103_v14 = vcombine.high %v2183_v56, %v2183_v56 }
 0x2d8   :  { %v728_v43 = vsel %vm205_vm6, %v719_v36, 0  ;;  %734 = vmatpush1.bf16.msra.mxu0 %v722_v40  ;;  %v1104_v34 = vcombine.high %v2184_v16, %v2184_v16 }
 0x2d9   :  { %2167 = vmatprep.subr.msk.bf16.mxu1 %vm205_vm6, %v720_v25  ;;  %2171 = vmatprep.subr.msk.bf16.mxu0 %vm78_vm2, %v850_v30  ;;  %v1108_v19 = vpack.c.bf16 %v1103_v14, %v1103_v14 }
 0x2da   :  { %775 = vmatpush1.bf16.msra.mxu1 %v728_v43  ;;  %v1107_v43 = vpack.c.bf16 %v2183_v56, %v2183_v56  ;;  %v1110_v46 = vpack.c.bf16 %v1104_v34, %v1104_v34 }
 0x2db   :  { %2173 = vmatprep.subr.msk.bf16.mxu1 %vm78_vm2, %v852_v31  ;;  %2166 = vmatmul.mubr.msk.bf16.vlgmr.msra.gmra.mrb[20].mxu0 %vm201_vm11, %v2410_v5 }
 0x2dc   :  { %866 = vmatpush1.bf16.msra.mxu0 %v854_v44  ;;  %897 = vmatprep.mubr.bf16.mxu0 %v2299_v0  ;;  %v1109_v44 = vpack.c.bf16 %v2184_v16, %v2184_v16 }
 0x2dd   :  { %2168 = vmatmul.mubr.msk.bf16.vlgmr.msra.gmra.mrb[20].mxu1 %vm201_vm11, %v2410_v5 }
 0x2de   :  { %907 = vmatpush1.bf16.msra.mxu1 %v860_v45  ;;  %938 = vmatprep.mubr.bf16.mxu1 %v2299_v0 }
 0x2e3   :  { %2172 = vmatmul.mubr.msk.bf16.vlgmr.msra.gmra.mrb[24].mxu0 %vm74_vm3, %v2365_v20 }
 0x2e4   :  { %1023 = vmatprep.mubr.bf16.mxu0 %v2299_v0 }
 0x2e5   :  { %2174 = vmatmul.mubr.msk.bf16.vlgmr.msra.gmra.mrb[24].mxu1 %vm74_vm3, %v2365_v20 }
 0x2e6   :  { %1064 = vmatprep.mubr.bf16.mxu1 %v2299_v0 }
 0x3ae   :  { %v767_v57 = vpop.f32.mrb[20].mxu0 }
 0x3af   :  { %v768_v58 = vadd.f32 %v767_v57, %v2440_v22  ;;  %v769_v60 = vpop.f32.mrb[21].mxu0 }
 0x3b0   :  { %v808_v59 = vpop.f32.mrb[20].mxu1  ;;  %v770_v63 = vadd.f32 %v769_v60, %v2440_v22  ;;  %v771_v1 = vpop.f32.mrb[22].mxu0 }
 0x3b1   :  { %v809_v62 = vadd.f32 %v808_v59, %v2440_v22  ;;  %v810_v38 = vpop.f32.mrb[21].mxu1  ;;  %v772_v3 = vpop.f32.mrb[23].mxu0  ;;  %v1344_v1 = vld [vmem:[#allocation2 + $0x58] sm:$0xff] }
 0x3b2   :  { %v811_v39 = vadd.f32 %v810_v38, %v2440_v22  ;;  %v812_v2 = vpop.f32.mrb[22].mxu1  ;;  %v819_v4 = vcombine.low %v768_v58, %v770_v63  ;;  %v1118_v63 = vsel %vm78_vm2, %v1109_v44, 0  ;;  %v1343_v38 = vld [vmem:[#allocation2 + $0x50] sm:$0xff] }
 0x3b3   :  { %v813_v6 = vpop.f32.mrb[23].mxu1  ;;  %v1346_v2 = vsub.f32 %v1344_v1, %v2564_v55 }
 0x3b4   :  { %v820_v8 = vcombine.low %v809_v62, %v811_v39  ;;  %824 = vst [vmem:[#allocation5 + $0x20] sm:$0xff] %v819_v4  ;;  %v1112_v62 = vsel %vm78_vm2, %v1107_v43, 0  ;;  %v1345_v39 = vsub.f32 %v1343_v38, %v2561_v53 }
 0x3b5   :  { %v1348_v4 = vmul.f32 0.5714286, %v1346_v2 }
 0x3b6   :  { %825 = vst [vmem:[#allocation5 + $0x28] sm:$0xff] %v820_v8  ;;  %v899_v9 = vpop.f32.mrb[24].mxu0  ;;  %v1347_v3 = vmul.f32 0.5714286, %v1345_v39 }
 0x3b7   :  { %v900_v10 = vadd.f32 %v899_v9, %v2379_v29  ;;  %v901_v12 = vpop.f32.mrb[25].mxu0  ;;  %v1350_v8 = vadd.f32 %v1348_v4, %v2564_v55 }
 0x3b8   :  { %v940_v11 = vpop.f32.mrb[24].mxu1  ;;  %v902_v51 = vadd.f32 %v901_v12, %v2379_v29  ;;  %v903_v54 = vpop.f32.mrb[26].mxu0  ;;  %v1349_v6 = vadd.f32 %v1347_v3, %v2561_v53 }
 0x3b9   :  { %v941_v13 = vadd.f32 %v940_v11, %v2379_v29  ;;  %v942_v15 = vpop.f32.mrb[25].mxu1  ;;  %v947_v17 = vsub.f32 %v900_v10, %v2525_v33  ;;  %v904_v26 = vpop.f32.mrb[27].mxu0  ;;  %vm1352_vm5 = vcmp.ge.f32.partialorder %v1350_v8, 1.0 }
 0x3ba   :  { %v943_v18 = vadd.f32 %v942_v15, %v2379_v29  ;;  %v944_v23 = vpop.f32.mrb[26].mxu1  ;;  %v948_v28 = vsub.f32 %v902_v51, %v2533_v41  ;;  %vm1351_vm4 = vcmp.ge.f32.partialorder %v1349_v6, 1.0  ;;  %v2626_v10 = vsel %vm1352_vm5, 0.0, %v1350_v8 }
 0x3bb   :  { %v949_v27 = vsub.f32 %v941_v13, %v2530_v37  ;;  %v945_v30 = vpop.f32.mrb[27].mxu1  ;;  %v951_v31 = vmul.f32 0.5714286, %v947_v17  ;;  %v2623_v9 = vsel %vm1351_vm4, 0.0, %v1349_v6 }
 0x3bc   :  { %v950_v32 = vsub.f32 %v943_v18, %v2535_v42  ;;  %v952_v24 = vmul.f32 0.5714286, %v948_v28 }
 0x3bd   :  { %v953_v61 = vmul.f32 0.5714286, %v949_v27  ;;  %v955_v35 = vadd.f32 %v951_v31, %v2525_v33 }
 0x3be   :  { %v954_v36 = vmul.f32 0.5714286, %v950_v32  ;;  %v956_v40 = vadd.f32 %v952_v24, %v2533_v41  ;;  %v2197_v24 = vsel %vm1351_vm4, 1.0, %v2300_v7 }
 0x3bf   :  { %v957_v25 = vadd.f32 %v953_v61, %v2530_v37  ;;  %vm959_vm14 = vcmp.ge.f32.partialorder %v955_v35, 1.0 }
 0x3c0   :  { %v958_v45 = vadd.f32 %v954_v36, %v2535_v42  ;;  %vm960_vm0 = vcmp.ge.f32.partialorder %v956_v40, 1.0  ;;  %v2175_v21 = vsel %vm959_vm14, 1.0, %v2300_v7  ;;  %v2587_v47 = vsel %vm959_vm14, 0.0, %v955_v35 }
 0x3c1   :  { %vm961_vm15 = vcmp.ge.f32.partialorder %v957_v25, 1.0  ;;  %v2176_v33 = vsel %vm960_vm0, 1.0, %v2300_v7  ;;  %v975_v48 = vpack.c.bf16 %v2175_v21, %v2175_v21  ;;  %v2595_v58 = vsel %vm960_vm0, 0.0, %v956_v40 }
 0x3c2   :  { %vm962_vm1 = vcmp.ge.f32.partialorder %v958_v45, 1.0  ;;  %v2177_v37 = vsel %vm961_vm15, 1.0, %v2300_v7  ;;  %v976_v49 = vpack.c.bf16 %v2176_v33, %v2176_v33  ;;  %v2592_v52 = vsel %vm961_vm15, 0.0, %v957_v25 }
 0x3c3   :  { %v2178_v41 = vsel %vm962_vm1, 1.0, %v2300_v7  ;;  %v977_v50 = vpack.c.bf16 %v2177_v37, %v2177_v37  ;;  %v980_v57 = vsel %vm205_vm6, %v975_v48, 0  ;;  %v2597_v59 = vsel %vm962_vm1, 0.0, %v958_v45 }
 0x3c4   :  { %v978_v42 = vpack.c.bf16 %v2178_v41, %v2178_v41  ;;  %2179 = vmatprep.subr.msk.bf16.mxu0 %vm205_vm6, %v976_v49  ;;  %v2198_v35 = vsel %vm1352_vm5, 1.0, %v2300_v7  ;;  %v1361_v33 = vcombine.high %v2197_v24, %v2197_v24 }
 0x3c5   :  { %v986_v60 = vsel %vm205_vm6, %v977_v50, 0  ;;  %992 = vmatpush1.bf16.msra.mxu0 %v980_v57  ;;  %v1362_v48 = vcombine.high %v2198_v35, %v2198_v35 }
 0x3c6   :  { %2181 = vmatprep.subr.msk.bf16.mxu1 %vm205_vm6, %v978_v42  ;;  %2185 = vmatprep.subr.msk.bf16.mxu0 %vm78_vm2, %v1108_v19  ;;  %v1366_v38 = vpack.c.bf16 %v1361_v33, %v1361_v33 }
 0x3c7   :  { %1033 = vmatpush1.bf16.msra.mxu1 %v986_v60  ;;  %v1365_v60 = vpack.c.bf16 %v2197_v24, %v2197_v24  ;;  %v1368_v1 = vpack.c.bf16 %v1362_v48, %v1362_v48 }
 0x3c8   :  { %2187 = vmatprep.subr.msk.bf16.mxu1 %vm78_vm2, %v1110_v46  ;;  %2180 = vmatmul.mubr.msk.bf16.vlgmr.msra.gmra.mrb[28].mxu0 %vm201_vm11, %v2410_v5 }
 0x3c9   :  { %1124 = vmatpush1.bf16.msra.mxu0 %v1112_v62  ;;  %1155 = vmatprep.mubr.bf16.mxu0 %v2299_v0  ;;  %v1367_v62 = vpack.c.bf16 %v2198_v35, %v2198_v35 }
 0x3ca   :  { %2182 = vmatmul.mubr.msk.bf16.vlgmr.msra.gmra.mrb[28].mxu1 %vm201_vm11, %v2410_v5 }
 0x3cb   :  { %1165 = vmatpush1.bf16.msra.mxu1 %v1118_v63  ;;  %1196 = vmatprep.mubr.bf16.mxu1 %v2299_v0 }
 0x3d0   :  { %2186 = vmatmul.mubr.msk.bf16.vlgmr.msra.gmra.mrb[32].mxu0 %vm74_vm3, %v2365_v20 }
 0x3d1   :  { %1281 = vmatprep.mubr.bf16.mxu0 %v2299_v0 }
 0x3d2   :  { %2188 = vmatmul.mubr.msk.bf16.vlgmr.msra.gmra.mrb[32].mxu1 %vm74_vm3, %v2365_v20 }
 0x3d3   :  { %1322 = vmatprep.mubr.bf16.mxu1 %v2299_v0 }
 0x49b   :  { %v1025_v11 = vpop.f32.mrb[28].mxu0 }
 0x49c   :  { %v1026_v12 = vadd.f32 %v1025_v11, %v2440_v22  ;;  %v1027_v51 = vpop.f32.mrb[29].mxu0 }
 0x49d   :  { %v1066_v13 = vpop.f32.mrb[28].mxu1  ;;  %v1028_v54 = vadd.f32 %v1027_v51, %v2440_v22  ;;  %v1029_v56 = vpop.f32.mrb[30].mxu0 }
 0x49e   :  { %v1067_v15 = vadd.f32 %v1066_v13, %v2440_v22  ;;  %v1068_v53 = vpop.f32.mrb[29].mxu1  ;;  %v1030_v17 = vpop.f32.mrb[31].mxu0  ;;  %v1602_v56 = vld [vmem:[#allocation2 + $0x68] sm:$0xff] }
 0x49f   :  { %v1069_v55 = vadd.f32 %v1068_v53, %v2440_v22  ;;  %v1070_v16 = vpop.f32.mrb[30].mxu1  ;;  %v1077_v18 = vcombine.low %v1026_v12, %v1028_v54  ;;  %v1376_v54 = vsel %vm78_vm2, %v1367_v62, 0  ;;  %v1601_v53 = vld [vmem:[#allocation2 + $0x60] sm:$0xff] }
 0x4a0   :  { %v1071_v23 = vpop.f32.mrb[31].mxu1  ;;  %v1604_v16 = vsub.f32 %v1602_v56, %v2626_v10 }
 0x4a1   :  { %v1078_v26 = vcombine.low %v1067_v15, %v1069_v55  ;;  %1082 = vst [vmem:[#allocation5 + $0x30] sm:$0xff] %v1077_v18  ;;  %v1370_v15 = vsel %vm78_vm2, %v1365_v60, 0  ;;  %v1603_v55 = vsub.f32 %v1601_v53, %v2623_v9 }
 0x4a2   :  { %v1606_v18 = vmul.f32 0.5714286, %v1604_v16 }
 0x4a3   :  { %1083 = vst [vmem:[#allocation5 + $0x38] sm:$0xff] %v1078_v26  ;;  %v1157_v27 = vpop.f32.mrb[32].mxu0  ;;  %v1605_v17 = vmul.f32 0.5714286, %v1603_v55 }
 0x4a4   :  { %v1158_v28 = vadd.f32 %v1157_v27, %v2379_v29  ;;  %v1159_v31 = vpop.f32.mrb[33].mxu0  ;;  %v1608_v26 = vadd.f32 %v1606_v18, %v2626_v10 }
 0x4a5   :  { %v1198_v30 = vpop.f32.mrb[32].mxu1  ;;  %v1160_v14 = vadd.f32 %v1159_v31, %v2379_v29  ;;  %v1161_v61 = vpop.f32.mrb[34].mxu0  ;;  %v1607_v23 = vadd.f32 %v1605_v17, %v2623_v9 }
 0x4a6   :  { %v1199_v32 = vadd.f32 %v1198_v30, %v2379_v29  ;;  %v1200_v34 = vpop.f32.mrb[33].mxu1  ;;  %v1205_v36 = vsub.f32 %v1158_v28, %v2587_v47  ;;  %v1162_v43 = vpop.f32.mrb[35].mxu0  ;;  %vm1610_vm13 = vcmp.ge.f32.partialorder %v1608_v26, 1.0 }
 0x4a7   :  { %v1201_v25 = vadd.f32 %v1200_v34, %v2379_v29  ;;  %v1202_v40 = vpop.f32.mrb[34].mxu1  ;;  %v1206_v45 = vsub.f32 %v1160_v14, %v2595_v58  ;;  %vm1609_vm12 = vcmp.ge.f32.partialorder %v1607_v23, 1.0  ;;  %v2688_v27 = vsel %vm1610_vm13, 0.0, %v1608_v26 }
 0x4a8   :  { %v1207_v44 = vsub.f32 %v1199_v32, %v2592_v52  ;;  %v1203_v19 = vpop.f32.mrb[35].mxu1  ;;  %v1209_v46 = vmul.f32 0.5714286, %v1205_v36 }
 0x4a9   :  { %v1208_v21 = vsub.f32 %v1201_v25, %v2597_v59  ;;  %v1210_v41 = vmul.f32 0.5714286, %v1206_v45 }
 0x4aa   :  { %v1211_v37 = vmul.f32 0.5714286, %v1207_v44  ;;  %v1213_v49 = vadd.f32 %v1209_v46, %v2587_v47 }
 0x4ab   :  { %v1212_v50 = vmul.f32 0.5714286, %v1208_v21  ;;  %v1214_v57 = vadd.f32 %v1210_v41, %v2595_v58  ;;  %v2212_v41 = vsel %vm1610_vm13, 1.0, %v2300_v7 }
 0x4ac   :  { %v1215_v42 = vadd.f32 %v1211_v37, %v2592_v52  ;;  %vm1217_vm7 = vcmp.ge.f32.partialorder %v1213_v49, 1.0  ;;  %v2211_v37 = vsel %vm1609_vm12, 1.0, %v2300_v7 }
 0x4ad   :  { %v1216_v63 = vadd.f32 %v1212_v50, %v2597_v59  ;;  %vm1218_vm9 = vcmp.ge.f32.partialorder %v1214_v57, 1.0  ;;  %v2189_v39 = vsel %vm1217_vm7, 1.0, %v2300_v7  ;;  %v2649_v2 = vsel %vm1217_vm7, 0.0, %v1213_v49 }
 0x4ae   :  { %vm1219_vm8 = vcmp.ge.f32.partialorder %v1215_v42, 1.0  ;;  %v2190_v47 = vsel %vm1218_vm9, 1.0, %v2300_v7  ;;  %v1233_v3 = vpack.c.bf16 %v2189_v39, %v2189_v39  ;;  %v2657_v12 = vsel %vm1218_vm9, 0.0, %v1214_v57 }
 0x4af   :  { %vm1220_vm10 = vcmp.ge.f32.partialorder %v1216_v63, 1.0  ;;  %v2191_v52 = vsel %vm1219_vm8, 1.0, %v2300_v7  ;;  %v1234_v4 = vpack.c.bf16 %v2190_v47, %v2190_v47  ;;  %v2654_v8 = vsel %vm1219_vm8, 0.0, %v1215_v42 }
 0x4b0   :  { %v2192_v58 = vsel %vm1220_vm10, 1.0, %v2300_v7  ;;  %v1235_v6 = vpack.c.bf16 %v2191_v52, %v2191_v52  ;;  %v1238_v11 = vsel %vm205_vm6, %v1233_v3, 0  ;;  %v2659_v13 = vsel %vm1220_vm10, 0.0, %v1216_v63 }
 0x4b1   :  { %v1236_v59 = vpack.c.bf16 %v2192_v58, %v2192_v58  ;;  %2193 = vmatprep.subr.msk.bf16.mxu0 %vm205_vm6, %v1234_v4  ;;  %v1619_v39 = vcombine.high %v2211_v37, %v2211_v37  ;;  %v1620_v47 = vcombine.high %v2212_v41, %v2212_v41 }
 0x4b2   :  { %v1244_v51 = vsel %vm205_vm6, %v1235_v6, 0  ;;  %1250 = vmatpush1.bf16.msra.mxu0 %v1238_v11  ;;  %v1623_v11 = vpack.c.bf16 %v2211_v37, %v2211_v37 }
 0x4b3   :  { %2195 = vmatprep.subr.msk.bf16.mxu1 %vm205_vm6, %v1236_v59  ;;  %2199 = vmatprep.subr.msk.bf16.mxu0 %vm78_vm2, %v1366_v38  ;;  %v1626_v53 = vpack.c.bf16 %v1620_v47, %v1620_v47 }
 0x4b4   :  { %1291 = vmatpush1.bf16.msra.mxu1 %v1244_v51  ;;  %v1625_v51 = vpack.c.bf16 %v2212_v41, %v2212_v41 }
 0x4b5   :  { %2201 = vmatprep.subr.msk.bf16.mxu1 %vm78_vm2, %v1368_v1  ;;  %2194 = vmatmul.mubr.msk.bf16.vlgmr.msra.gmra.mrb[36].mxu0 %vm201_vm11, %v2410_v5 }
 0x4b6   :  { %1382 = vmatpush1.bf16.msra.mxu0 %v1370_v15  ;;  %1413 = vmatprep.mubr.bf16.mxu0 %v2299_v0 }
 0x4b7   :  { %2196 = vmatmul.mubr.msk.bf16.vlgmr.msra.gmra.mrb[36].mxu1 %vm201_vm11, %v2410_v5 }
 0x4b8   :  { %1423 = vmatpush1.bf16.msra.mxu1 %v1376_v54  ;;  %1454 = vmatprep.mubr.bf16.mxu1 %v2299_v0  ;;  %v1624_v54 = vpack.c.bf16 %v1619_v39, %v1619_v39 }
 0x4bd   :  { %2200 = vmatmul.mubr.msk.bf16.vlgmr.msra.gmra.mrb[40].mxu0 %vm74_vm3, %v2365_v20 }
 0x4be   :  { %1539 = vmatprep.mubr.bf16.mxu0 %v2299_v0 }
 0x4bf   :  { %2202 = vmatmul.mubr.msk.bf16.vlgmr.msra.gmra.mrb[40].mxu1 %vm74_vm3, %v2365_v20  ;;  %v2685_v20 = vsel %vm1609_vm12, 0.0, %v1607_v23 }
 0x4c0   :  { %1580 = vmatprep.mubr.bf16.mxu1 %v2299_v0 }
 0x588   :  { %v1283_v28 = vpop.f32.mrb[36].mxu0 }
 0x589   :  { %v1284_v30 = vadd.f32 %v1283_v28, %v2440_v22  ;;  %v1285_v32 = vpop.f32.mrb[37].mxu0 }
 0x58a   :  { %v1324_v31 = vpop.f32.mrb[36].mxu1  ;;  %v1286_v34 = vadd.f32 %v1285_v32, %v2440_v22  ;;  %v1287_v61 = vpop.f32.mrb[38].mxu0  ;;  %v1628_v32 = vsel %vm78_vm2, %v1623_v11, 0 }
 0x58b   :  { %v1325_v14 = vadd.f32 %v1324_v31, %v2440_v22  ;;  %v1326_v9 = vpop.f32.mrb[37].mxu1  ;;  %v1288_v35 = vpop.f32.mrb[39].mxu0 }
 0x58c   :  { %v1327_v10 = vadd.f32 %v1326_v9, %v2440_v22  ;;  %v1328_v24 = vpop.f32.mrb[38].mxu1  ;;  %v1335_v36 = vcombine.low %v1284_v30, %v1286_v34  ;;  %v2739_v34 = vld [vmem:[%s2842_s1] sm:$0xf]  ;;  %v1860_v9 = vld [vmem:[#allocation2 + $0x78] sm:$0xff] }
 0x58d   :  { %v1329_v25 = vpop.f32.mrb[39].mxu1 }
 0x58e   :  { %v1336_v40 = vcombine.low %v1325_v14, %v1327_v10  ;;  %1340 = vst [vmem:[#allocation5 + $0x40] sm:$0xff] %v1335_v36  ;;  %v1634_v14 = vsel %vm78_vm2, %v1625_v51, 0  ;;  %v1862_v10 = vsub.f32 %v1860_v9, %v2688_v27 }
 0x590   :  { %1341 = vst [vmem:[#allocation5 + $0x48] sm:$0xff] %v1336_v40  ;;  %v1415_v43 = vpop.f32.mrb[40].mxu0  ;;  %v1864_v35 = vmul.f32 0.5714286, %v1862_v10 }
 0x591   :  { %v1416_v44 = vadd.f32 %v1415_v43, %v2379_v29  ;;  %v1417_v19 = vpop.f32.mrb[41].mxu0 }
 0x592   :  { %v1456_v45 = vpop.f32.mrb[40].mxu1  ;;  %v1418_v21 = vadd.f32 %v1417_v19, %v2379_v29  ;;  %v1419_v48 = vpop.f32.mrb[42].mxu0  ;;  %v1866_v41 = vadd.f32 %v1864_v35, %v2688_v27 }
 0x593   :  { %v1457_v46 = vadd.f32 %v1456_v45, %v2379_v29  ;;  %v1458_v33 = vpop.f32.mrb[41].mxu1  ;;  %v1463_v49 = vsub.f32 %v1416_v44, %v2649_v2  ;;  %v1420_v57 = vpop.f32.mrb[43].mxu0 }
 0x594   :  { %v1459_v50 = vadd.f32 %v1458_v33, %v2379_v29  ;;  %v1460_v42 = vpop.f32.mrb[42].mxu1  ;;  %v1464_v62 = vsub.f32 %v1418_v21, %v2657_v12  ;;  %vm1868_vm5 = vcmp.ge.f32.partialorder %v1866_v41, 1.0 }
 0x595   :  { %v1465_v60 = vsub.f32 %v1457_v46, %v2654_v8  ;;  %v1461_v63 = vpop.f32.mrb[43].mxu1  ;;  %v1467_v38 = vmul.f32 0.5714286, %v1463_v49  ;;  %v2226_v47 = vsel %vm1868_vm5, 1.0, %v2300_v7 }
 0x596   :  { %v1466_v1 = vsub.f32 %v1459_v50, %v2659_v13  ;;  %v1468_v52 = vmul.f32 0.5714286, %v1464_v62 }
 0x597   :  { %v1469_v3 = vmul.f32 0.5714286, %v1465_v60  ;;  %v1471_v58 = vadd.f32 %v1467_v38, %v2649_v2 }
 0x598   :  { %v1470_v4 = vmul.f32 0.5714286, %v1466_v1  ;;  %v1472_v59 = vadd.f32 %v1468_v52, %v2657_v12 }
 0x599   :  { %v1473_v6 = vadd.f32 %v1469_v3, %v2654_v8  ;;  %vm1475_vm14 = vcmp.ge.f32.partialorder %v1471_v58, 1.0 }
 0x59a   :  { %v1474_v15 = vadd.f32 %v1470_v4, %v2659_v13  ;;  %vm1476_vm0 = vcmp.ge.f32.partialorder %v1472_v59, 1.0  ;;  %v2203_v56 = vsel %vm1475_vm14, 1.0, %v2300_v7  ;;  %v2711_v55 = vsel %vm1475_vm14, 0.0, %v1471_v58 }
 0x59b   :  { %vm1477_vm15 = vcmp.ge.f32.partialorder %v1473_v6, 1.0  ;;  %v2204_v2 = vsel %vm1476_vm0, 1.0, %v2300_v7  ;;  %v1491_v16 = vpack.c.bf16 %v2203_v56, %v2203_v56  ;;  %v2719_v28 = vsel %vm1476_vm0, 0.0, %v1472_v59 }
 0x59c   :  { %vm1478_vm1 = vcmp.ge.f32.partialorder %v1474_v15, 1.0  ;;  %v2205_v8 = vsel %vm1477_vm15, 1.0, %v2300_v7  ;;  %v1492_v17 = vpack.c.bf16 %v2204_v2, %v2204_v2  ;;  %v2716_v23 = vsel %vm1477_vm15, 0.0, %v1473_v6 }
 0x59d   :  { %v2206_v12 = vsel %vm1478_vm1, 1.0, %v2300_v7  ;;  %v1493_v18 = vpack.c.bf16 %v2205_v8, %v2205_v8  ;;  %v1496_v26 = vsel %vm205_vm6, %v1491_v16, 0  ;;  %v2721_v30 = vsel %vm1478_vm1, 0.0, %v1474_v15 }
 0x59e   :  { %v1494_v13 = vpack.c.bf16 %v2206_v12, %v2206_v12  ;;  %2207 = vmatprep.subr.msk.bf16.mxu0 %vm205_vm6, %v1492_v17 }
 0x59f   :  { %v1502_v31 = vsel %vm205_vm6, %v1493_v18, 0  ;;  %1508 = vmatpush1.bf16.msra.mxu0 %v1496_v26 }
 0x5a0   :  { %2209 = vmatprep.subr.msk.bf16.mxu1 %vm205_vm6, %v1494_v13  ;;  %2213 = vmatprep.subr.msk.bf16.mxu0 %vm78_vm2, %v1624_v54  ;;  %v1881_v13 = vpack.c.bf16 %v2226_v47, %v2226_v47 }
 0x5a1   :  { %1549 = vmatpush1.bf16.msra.mxu1 %v1502_v31 }
 0x5a2   :  { %2215 = vmatprep.subr.msk.bf16.mxu1 %vm78_vm2, %v1626_v53  ;;  %2208 = vmatmul.mubr.msk.bf16.vlgmr.msra.gmra.mrb[44].mxu0 %vm201_vm11, %v2410_v5  ;;  %v1876_v53 = vcombine.high %v2226_v47, %v2226_v47 }
 0x5a3   :  { %1640 = vmatpush1.bf16.msra.mxu0 %v1628_v32  ;;  %1671 = vmatprep.mubr.bf16.mxu0 %v2299_v0 }
 0x5a4   :  { %2210 = vmatmul.mubr.msk.bf16.vlgmr.msra.gmra.mrb[44].mxu1 %vm201_vm11, %v2410_v5  ;;  %v1859_v5 = vld [vmem:[#allocation2 + $0x70] sm:$0xff]  ;;  %v1882_v32 = vpack.c.bf16 %v1876_v53, %v1876_v53 }
 0x5a5   :  { %1681 = vmatpush1.bf16.msra.mxu1 %v1634_v14  ;;  %1712 = vmatprep.mubr.bf16.mxu1 %v2299_v0  ;;  %v1861_v61 = vsub.f32 %v1859_v5, %v2685_v20 }
 0x5a7   :  { %v1863_v24 = vmul.f32 0.5714286, %v1861_v61 }
 0x5a9   :  { %v1865_v37 = vadd.f32 %v1863_v24, %v2685_v20 }
 0x5aa   :  { %2214 = vmatmul.mubr.msk.bf16.vlgmr.msra.gmra.mrb[48].mxu0 %vm74_vm3, %v2739_v34 }
 0x5ab   :  { %1797 = vmatprep.mubr.bf16.mxu0 %v2299_v0  ;;  %vm1867_vm4 = vcmp.ge.f32.partialorder %v1865_v37, 1.0 }
 0x5ac   :  { %2216 = vmatmul.mubr.msk.bf16.vlgmr.msra.gmra.mrb[48].mxu1 %vm74_vm3, %v2739_v34  ;;  %v2225_v27 = vsel %vm1867_vm4, 1.0, %v2300_v7 }
 0x5ad   :  { %1838 = vmatprep.mubr.bf16.mxu1 %v2299_v0  ;;  %v1875_v54 = vcombine.high %v2225_v27, %v2225_v27  ;;  %v1879_v18 = vpack.c.bf16 %v2225_v27, %v2225_v27 }
 0x5af   :  { %v1880_v31 = vpack.c.bf16 %v1875_v54, %v1875_v54 }
 0x675   :  { %v1541_v36 = vpop.f32.mrb[44].mxu0 }
 0x676   :  { %v1542_v25 = vadd.f32 %v1541_v36, %v2440_v22  ;;  %v1543_v43 = vpop.f32.mrb[45].mxu0 }
 0x677   :  { %v1582_v40 = vpop.f32.mrb[44].mxu1  ;;  %v1544_v45 = vadd.f32 %v1543_v43, %v2440_v22  ;;  %v1545_v46 = vpop.f32.mrb[46].mxu0  ;;  %v1884_v43 = vsel %vm78_vm2, %v1879_v18, 0 }
 0x678   :  { %v1583_v44 = vadd.f32 %v1582_v40, %v2440_v22  ;;  %v1584_v19 = vpop.f32.mrb[45].mxu1  ;;  %v1546_v48 = vpop.f32.mrb[47].mxu0 }
 0x679   :  { %v1585_v21 = vadd.f32 %v1584_v19, %v2440_v22  ;;  %v1586_v33 = vpop.f32.mrb[46].mxu1  ;;  %v1593_v49 = vcombine.low %v1542_v25, %v1544_v45  ;;  %v2786_v45 = vld [vmem:[%s2844_s3] sm:$0x3]  ;;  %s2301_s3 = smov [#allocation5]  }
 0x67a   :  { %v1587_v50 = vpop.f32.mrb[47].mxu1  ;;  %s2115_s15 = sshll.u32 %s2301_s3, 4  ;;  %s2116_s15 = int_to_ptr.vmem [resolvable:$true] %s2115_s15 }
 0x67b   :  { %v1594_v42 = vcombine.low %v1583_v44, %v1585_v21  ;;  %1598 = vst [vmem:[#allocation5 + $0x50] sm:$0xff] %v1593_v49  ;;  %v1890_v44 = vsel %vm78_vm2, %v1881_v13, 0  ;;  %s2270_s16 = scalar_lea.vmem %s2116_s15, 2048  ;;  %p2275_p9 = scmp.lt.s32.totalorder %s2116_s15, %s2116_s15 }
 0x67c   :  { %p2271_p8 = scmp.ne.s32.totalorder %s2116_s15, %s2270_s16  ;;  %p2276_p10 = scmp.lt.s32.totalorder %s2270_s16, %s2270_s16 }
 0x67d   :  { %1599 = vst [vmem:[#allocation5 + $0x58] sm:$0xff] %v1594_v42  ;;  %v1673_v57 = vpop.f32.mrb[48].mxu0 }
 0x67e   :  { %v1674_v60 = vadd.f32 %v1673_v57, %v2379_v29  ;;  %v1675_v63 = vpop.f32.mrb[49].mxu0  ;;  %p2277_p11 = por %p2276_p10, %p2275_p9 }
 0x67f   :  { %v1714_v62 = vpop.f32.mrb[48].mxu1  ;;  %v1676_v1 = vadd.f32 %v1675_v63, %v2379_v29  ;;  %v1677_v20 = vpop.f32.mrb[50].mxu0 }
 0x680   :  { %v1715_v38 = vadd.f32 %v1714_v62, %v2379_v29  ;;  %v1716_v39 = vpop.f32.mrb[49].mxu1  ;;  %v1721_v3 = vsub.f32 %v1674_v60, %v2711_v55  ;;  %v1678_v4 = vpop.f32.mrb[51].mxu0  ;;  %p2278_p12 = pnand %p2277_p11, %p2271_p8 }
 0x681   :  { %v1717_v52 = vadd.f32 %v1716_v39, %v2379_v29  ;;  %v1718_v58 = vpop.f32.mrb[50].mxu1  ;;  %v1722_v59 = vsub.f32 %v1676_v1, %v2719_v28 }
 0x682   :  { %v1723_v6 = vsub.f32 %v1715_v38, %v2716_v23  ;;  %v1719_v11 = vpop.f32.mrb[51].mxu1  ;;  %v1725_v51 = vmul.f32 0.5714286, %v1721_v3 }
 0x683   :  { %v1724_v15 = vsub.f32 %v1717_v52, %v2721_v30  ;;  %v1726_v2 = vmul.f32 0.5714286, %v1722_v59 }
 0x684   :  { %v1727_v56 = vmul.f32 0.5714286, %v1723_v6  ;;  %v1729_v16 = vadd.f32 %v1725_v51, %v2711_v55 }
 0x685   :  { %v1728_v8 = vmul.f32 0.5714286, %v1724_v15  ;;  %v1730_v17 = vadd.f32 %v1726_v2, %v2719_v28 }
 0x686   :  { %v1731_v12 = vadd.f32 %v1727_v56, %v2716_v23  ;;  %vm1733_vm7 = vcmp.ge.f32.partialorder %v1729_v16, 1.0 }
 0x687   :  { %v1732_v26 = vadd.f32 %v1728_v8, %v2721_v30  ;;  %vm1734_vm9 = vcmp.ge.f32.partialorder %v1730_v17, 1.0  ;;  %v2217_v14 = vsel %vm1733_vm7, 1.0, %v2300_v7  ;;  %v2770_v5 = vsel %vm1733_vm7, 0.0, %v1729_v16 }
 0x688   :  { %vm1735_vm8 = vcmp.ge.f32.partialorder %v1731_v12, 1.0  ;;  %v2218_v55 = vsel %vm1734_vm9, 1.0, %v2300_v7  ;;  %v1749_v9 = vpack.c.bf16 %v2217_v14, %v2217_v14  ;;  %v1738_v36 = vsel %vm1734_vm9, 0.0, %v1730_v17 }
 0x689   :  { %vm1736_vm10 = vcmp.ge.f32.partialorder %v1732_v26, 1.0  ;;  %v2219_v23 = vsel %vm1735_vm8, 1.0, %v2300_v7  ;;  %v1750_v61 = vpack.c.bf16 %v2218_v55, %v2218_v55  ;;  %v1739_v24 = vsel %vm1735_vm8, 0.0, %v1731_v12 }
 0x68a   :  { %v2220_v28 = vsel %vm1736_vm10, 1.0, %v2300_v7  ;;  %v1751_v10 = vpack.c.bf16 %v2219_v23, %v2219_v23  ;;  %v1754_v35 = vsel %vm205_vm6, %v1749_v9, 0  ;;  %v1740_v25 = vsel %vm1736_vm10, 0.0, %v1732_v26 }
 0x68b   :  { %v1752_v30 = vpack.c.bf16 %v2220_v28, %v2220_v28  ;;  %2221 = vmatprep.subr.msk.bf16.mxu0 %vm205_vm6, %v1750_v61 }
 0x68c   :  { %v1760_v40 = vsel %vm205_vm6, %v1751_v10, 0  ;;  %1766 = vmatpush1.bf16.msra.mxu0 %v1754_v35 }
 0x68d   :  { %2223 = vmatprep.subr.msk.bf16.mxu1 %vm205_vm6, %v1752_v30  ;;  %2227 = vmatprep.subr.msk.bf16.mxu0 %vm78_vm2, %v1880_v31 }
 0x68e   :  { %1807 = vmatpush1.bf16.msra.mxu1 %v1760_v40 }
 0x68f   :  { %2229 = vmatprep.subr.msk.bf16.mxu1 %vm78_vm2, %v1882_v32  ;;  %2222 = vmatmul.mubr.msk.bf16.vlgmr.msra.gmra.mrb[52].mxu0 %vm201_vm11, %v2786_v45 }
 0x690   :  { %1896 = vmatpush1.bf16.msra.mxu0 %v1884_v43  ;;  %1927 = vmatprep.mubr.bf16.mxu0 %v2299_v0 }
 0x691   :  { %2224 = vmatmul.mubr.msk.bf16.vlgmr.msra.gmra.mrb[52].mxu1 %vm201_vm11, %v2786_v45 }
 0x692   :  { %1937 = vmatpush1.bf16.msra.mxu1 %v1890_v44  ;;  %1968 = vmatprep.mubr.bf16.mxu1 %v2299_v0 }
 0x697   :  { %2228 = vmatmul.mubr.msk.bf16.vlgmr.msra.gmra.mrb[56].mxu0 %vm74_vm3, %v2739_v34 }
 0x698   :  { %2049 = vmatprep.mubr.bf16.mxu0 %v2299_v0 }
 0x699   :  { %2230 = vmatmul.mubr.msk.bf16.vlgmr.msra.gmra.mrb[56].mxu1 %vm74_vm3, %v2739_v34 }
 0x69a   :  { %2090 = vmatprep.mubr.bf16.mxu1 %v2299_v0 }
 0x762   :  { %v1799_v19 = vpop.f32.mrb[52].mxu0 }
 0x763   :  { %v1800_v46 = vadd.f32 %v1799_v19, %v2440_v22  ;;  %v1801_v33 = vpop.f32.mrb[53].mxu0 }
 0x764   :  { %v1840_v21 = vpop.f32.mrb[52].mxu1  ;;  %v1802_v37 = vadd.f32 %v1801_v33, %v2440_v22  ;;  %v1803_v49 = vpop.f32.mrb[54].mxu0 }
 0x765   :  { %v1841_v48 = vadd.f32 %v1840_v21, %v2440_v22  ;;  %v1842_v41 = vpop.f32.mrb[53].mxu1  ;;  %v1804_v57 = vpop.f32.mrb[55].mxu0 }
 0x766   :  { %v1843_v50 = vadd.f32 %v1842_v41, %v2440_v22  ;;  %v1844_v42 = vpop.f32.mrb[54].mxu1  ;;  %v1851_v34 = vcombine.low %v1800_v46, %v1802_v37 }
 0x767   :  { %v1845_v60 = vpop.f32.mrb[55].mxu1 }
 0x768   :  { %v1852_v62 = vcombine.low %v1841_v48, %v1843_v50  ;;  %1856 = vst [vmem:[#allocation5 + $0x60] sm:$0xff] %v1851_v34 }
 0x76a   :  { %1857 = vst [vmem:[#allocation5 + $0x68] sm:$0xff] %v1852_v62  ;;  %v1929_v0 = vpop.f32.mrb[56].mxu0 }
 0x76b   :  { %v1930_v63 = vadd.f32 %v1929_v0, %v2379_v29  ;;  %v1931_v1 = vpop.f32.mrb[57].mxu0 }
 0x76c   :  { %v1970_v38 = vpop.f32.mrb[56].mxu1  ;;  %v1932_v20 = vadd.f32 %v1931_v1, %v2379_v29  ;;  %v1933_v47 = vpop.f32.mrb[58].mxu0 }
 0x76d   :  { %v1971_v39 = vadd.f32 %v1970_v38, %v2379_v29  ;;  %v1972_v27 = vpop.f32.mrb[57].mxu1  ;;  %v1977_v3 = vsub.f32 %v1930_v63, %v2770_v5  ;;  %v1934_v4 = vpop.f32.mrb[59].mxu0 }
 0x76e   :  { %v1973_v52 = vadd.f32 %v1972_v27, %v2379_v29  ;;  %v1974_v58 = vpop.f32.mrb[58].mxu1  ;;  %v1978_v59 = vsub.f32 %v1932_v20, %v1738_v36 }
 0x76f   :  { %v1979_v6 = vsub.f32 %v1971_v39, %v1739_v24  ;;  %v1975_v11 = vpop.f32.mrb[59].mxu1  ;;  %v1981_v51 = vmul.f32 0.5714286, %v1977_v3 }
 0x770   :  { %v1980_v15 = vsub.f32 %v1973_v52, %v1740_v25  ;;  %v1982_v53 = vmul.f32 0.5714286, %v1978_v59 }
 0x771   :  { %v1983_v54 = vmul.f32 0.5714286, %v1979_v6  ;;  %v1985_v56 = vadd.f32 %v1981_v51, %v2770_v5 }
 0x772   :  { %v1984_v2 = vmul.f32 0.5714286, %v1980_v15  ;;  %v1986_v8 = vadd.f32 %v1982_v53, %v1738_v36 }
 0x773   :  { %v1987_v16 = vadd.f32 %v1983_v54, %v1739_v24  ;;  %vm1989_vm2 = vcmp.ge.f32.partialorder %v1985_v56, 1.0 }
 0x774   :  { %v1988_v12 = vadd.f32 %v1984_v2, %v1740_v25  ;;  %vm1990_vm12 = vcmp.ge.f32.partialorder %v1986_v8, 1.0  ;;  %v2231_v29 = vsel %vm1989_vm2, 1.0, %v2300_v7 }
 0x775   :  { %vm1991_vm3 = vcmp.ge.f32.partialorder %v1987_v16, 1.0  ;;  %v2232_v17 = vsel %vm1990_vm12, 1.0, %v2300_v7  ;;  %v2001_v18 = vpack.c.bf16 %v2231_v29, %v2231_v29 }
 0x776   :  { %vm1992_vm13 = vcmp.ge.f32.partialorder %v1988_v12, 1.0  ;;  %v2233_v13 = vsel %vm1991_vm3, 1.0, %v2300_v7  ;;  %v2002_v26 = vpack.c.bf16 %v2232_v17, %v2232_v17 }
 0x777   :  { %v2234_v31 = vsel %vm1992_vm13, 1.0, %v2300_v7  ;;  %v2003_v32 = vpack.c.bf16 %v2233_v13, %v2233_v13  ;;  %v2006_v5 = vsel %vm205_vm6, %v2001_v18, 0 }
 0x778   :  { %v2004_v14 = vpack.c.bf16 %v2234_v31, %v2234_v31  ;;  %2235 = vmatprep.subr.msk.bf16.mxu0 %vm205_vm6, %v2002_v26 }
 0x779   :  { %v2012_v55 = vsel %vm205_vm6, %v2003_v32, 0  ;;  %2018 = vmatpush1.bf16.msra.mxu0 %v2006_v5 }
 0x77a   :  { %2237 = vmatprep.subr.msk.bf16.mxu1 %vm205_vm6, %v2004_v14 }
 0x77b   :  { %2059 = vmatpush1.bf16.msra.mxu1 %v2012_v55 }
 0x77c   :  { %2236 = vmatmul.mubr.msk.bf16.vlgmr.msra.gmra.mrb[60].mxu0 %vm201_vm11, %v2786_v45 }
 0x77e   :  { %2238 = vmatmul.mubr.msk.bf16.vlgmr.msra.gmra.mrb[60].mxu1 %vm201_vm11, %v2786_v45 }
 0x84f   :  { %v2051_v9 = vpop.f32.mrb[60].mxu0 }
 0x850   :  { %v2052_v7 = vadd.f32 %v2051_v9, %v2440_v22  ;;  %v2053_v28 = vpop.f32.mrb[61].mxu0 }
 0x851   :  { %v2092_v23 = vpop.f32.mrb[60].mxu1  ;;  %v2054_v10 = vadd.f32 %v2053_v28, %v2440_v22  ;;  %v2055_v30 = vpop.f32.mrb[62].mxu0 }
 0x852   :  { %v2093_v61 = vadd.f32 %v2092_v23, %v2440_v22  ;;  %v2094_v24 = vpop.f32.mrb[61].mxu1  ;;  %v2056_v25 = vpop.f32.mrb[63].mxu0 }
 0x853   :  { %v2095_v35 = vadd.f32 %v2094_v24, %v2440_v22  ;;  %v2096_v36 = vpop.f32.mrb[62].mxu1  ;;  %v2103_v40 = vcombine.low %v2052_v7, %v2054_v10 }
 0x854   :  { %v2097_v43 = vpop.f32.mrb[63].mxu1 }
 0x855   :  { %v2104_v44 = vcombine.low %v2093_v61, %v2095_v35  ;;  %2108 = vst [vmem:[#allocation5 + $0x70] sm:$0xff] %v2103_v40 }
 0x857   :  { %2109 = vst [vmem:[#allocation5 + $0x78] sm:$0xff] %v2104_v44 }
 0x858   :  { %2281 = shalt.err (!%p2278_p12)
}
 0x859   :  { %s2282_s19 = scalar_lea.hbm %s2846_s5, 2048 }
 0x85a   :  { %p2283_p13 = scmp.ne.s32.totalorder %s2846_s5, %s2282_s19  ;;  %p2286_p0 = scmp.lt.u32.totalorder %s2282_s19, %s2846_s5 }
 0x85c   :  { %p2288_p1 = pnand %p2286_p0, %p2283_p13 }
 0x85e   :  { %2291 = shalt.err (!%p2288_p1)
}
 0x85f   :  { %2121 = dma.vmem_to_hbm [thread:$0]  %s2116_s15, 2048, %s2846_s5, [#allocation4], %s2297_s28, %s2297_s28, %s2298_s29  }
 0x860   :  { %2294 = dma.done.wait [#allocation4], 2048  }
 0x861   :  { %2295 = vsyncadd [#allocation4], 4294965248 }
 0x862   :  { %2125 = vsyncpa [#allocation3], 1 }
 0x863   :  { %2126 = vsyncpa [#allocation4], 1 }

</bundles_post_ra>
